<compile_context>
chip_gen: v7x
topology: tpu7x:2x2x1
jax: 0.10.0
libtpu: 0.0.40
codegen_flags: <defaults>
</compile_context>

<pallas_src>
import functools
import math

import jax
import jax.numpy as jnp
from jax.experimental import pallas as pl
from jax.experimental.pallas import tpu as pltpu

_BN_EPS = 1e-5
_L2_EPS = 1e-12


# --------------------------------------------------------------------------------------------
# helpers
# --------------------------------------------------------------------------------------------
def _full_spec(shape):
    return pl.BlockSpec(shape, lambda: tuple(0 for _ in shape))


def _vmem_capacity_bytes():
    """Physical per-TensorCore VMEM; generation-aware, with a conservative fallback."""
    try:
        return int(pltpu.get_tpu_info().vmem_capacity_bytes)
    except Exception:
        return 64 * 1024 * 1024          # v7x per-TC size == smallest across supported gens


def _vmem_limit(est_bytes, cap):
    """Scoped-VMEM limit: cover our estimate with 2x headroom, never exceed ~85% of physical."""
    return int(min(0.85 * cap, max(2 * est_bytes, 32 * 1024 * 1024)))


def _pick_col_tile(n_cols, k_rows, b_rows, itemsize, cap):
    """Largest lane-dense (multiple-of-128) column tile such that the resident LHS +
    3-deep streamed weight slab + double-buffered f32 output fit a per-generation budget."""
    if n_cols <= 128 or n_cols % 128 != 0:
        return n_cols                     # single full-width block (no column streaming)
    budget = int(0.55 * cap)
    resident = 2 * b_rows * k_rows * itemsize              # LHS (counted double, conservative)
    for tn in (2048, 1024, 512, 256, 128):
        if n_cols % tn:
            continue
        if resident + 3 * k_rows * tn * itemsize + 2 * b_rows * tn * 4 <= budget:
            return tn
    return 128


def _batch_norm_train(g, gamma, beta):
    """Training-mode BatchNorm1d over the row (batch) axis; gamma folded into the rsqrt scale."""
    mean = jnp.mean(g, axis=0, keepdims=True)
    var = jnp.mean(jnp.square(g - mean), axis=0, keepdims=True)
    scale = gamma * jax.lax.rsqrt(var + _BN_EPS)
    return (g - mean) * scale + beta


# --------------------------------------------------------------------------------------------
# kernels
# --------------------------------------------------------------------------------------------
def _assign_vlad_kernel(x_ref, cw_ref, p0_ref, p1_ref, cw2_ref, *rest,
                        add_batch_norm, use_token_weight):
    """Fused: soft cluster assignment + VLAD aggregation + intra/global L2 normalization."""
    out_ref = rest[-1]
    tw_ref = rest[0] if use_token_weight else None
    B, N, C = x_ref.shape
    K = cw_ref.shape[1]

    x = x_ref[...]                                                        # (B, N, C) f32
    g = jnp.dot(x.reshape(B * N, C), cw_ref[...],
                preferred_element_type=jnp.float32)                       # (B*N, K)
    if add_batch_norm:
        g = _batch_norm_train(g, p0_ref[...], p1_ref[...])                # full-batch stats
    else:
        g = g + p0_ref[...]
    g = g - jnp.max(g, axis=-1, keepdims=True)
    e = jnp.exp(g)
    act = (e / jnp.sum(e, axis=-1, keepdims=True)).reshape(B, N, K)       # softmax over K
    if use_token_weight:
        act = act * jax.nn.sigmoid(tw_ref[...])[:, :, None]

    # vlad[b, c, k] = sum_n x[b, n, c] * act[b, n, k]   (batched MXU contraction over N)
    vlad = jnp.einsum("bnc,bnk->bck", x, act, preferred_element_type=jnp.float32)
    a_sum = jnp.sum(act, axis=1, keepdims=True)                           # (B, 1, K)
    vlad = vlad - a_sum * cw2_ref[...]                                    # cw2 is (1, C, K)
    # F.normalize(vlad, dim=1): per-cluster L2 over the feature axis C.
    inorm = jnp.sqrt(jnp.sum(jnp.square(vlad), axis=1, keepdims=True))    # (B, 1, K)
    vlad = vlad / jnp.maximum(inorm, _L2_EPS)
    # F.normalize of the flattened (C*K,) descriptor == divide by the Frobenius norm.
    g2 = jnp.sum(jnp.square(vlad), axis=1, keepdims=True)                 # (B, 1, K)
    gnorm = jnp.sqrt(jnp.sum(g2, axis=2, keepdims=True))                  # (B, 1, 1)
    vlad = vlad / jnp.maximum(gnorm, _L2_EPS)
    out_ref[...] = vlad.astype(out_ref.dtype)


def _hidden_bn2_kernel(v_ref, w_ref, gamma_ref, beta_ref, h_ref):
    """One output-column tile of  h = BN2(vlad_flat @ hidden1_weights)."""
    g = jnp.dot(v_ref[...], w_ref[...], preferred_element_type=jnp.float32)   # (B, TN) f32
    h_ref[...] = _batch_norm_train(g, gamma_ref[...], beta_ref[...]).astype(h_ref.dtype)


def _gating_kernel(h_ref, w_ref, p0_ref, p1_ref, o_ref, *, add_batch_norm, tn):
    """One output-column tile of  out = h * sigmoid(BN(h @ gating_weights))."""
    h = h_ref[...]                                                        # (B, D) resident LHS
    g = jnp.dot(h, w_ref[...], preferred_element_type=jnp.float32)        # (B, TN) f32
    if add_batch_norm:
        g = _batch_norm_train(g, p0_ref[...], p1_ref[...])
    else:
        g = g + p0_ref[...]
    gates = jax.nn.sigmoid(g)
    if tn == h_ref.shape[1]:
        h_tile = h                                         # single column tile: reuse full load
    else:
        col0 = pl.multiple_of(pl.program_id(0) * tn, tn)   # slice resident h; no second stream
        h_tile = h_ref[:, pl.ds(col0, tn)]
    o_ref[...] = (h_tile.astype(jnp.float32) * gates).astype(o_ref.dtype)


# --------------------------------------------------------------------------------------------
# wrapper
# --------------------------------------------------------------------------------------------
def netvlad_loupe_forward(x, params, *, add_batch_norm=True, gating=True,
                          work_with_tokens=True, token_weight=None,
                          use_bf16_matmul=False):
    """Pallas implementation of NetVLADLoupe.forward.

    x: (B, N, C) token features if work_with_tokens else (B, C, N, 1).
    params: cluster_weights (C,K), cluster_weights2 (1,C,K), hidden1_weights (C*K,Dout),
            bn1_gamma/bn1_beta (K,) or cluster_biases (K,), bn2_gamma/bn2_beta (Dout,),
            gating_weights (Dout,Dout), gating_bn_gamma/gating_bn_beta (Dout,) or gating_biases.
    """
    if not work_with_tokens:
        x = jnp.transpose(x[..., 0], (0, 2, 1))        # (B, C, N, 1) -> (B, N, C); layout only
    x = x.astype(jnp.float32)
    B, N, C = x.shape
    K = params["cluster_weights"].shape[1]
    Dout = params["hidden1_weights"].shape[1]
    CK = C * K
    compute_dtype = jnp.bfloat16 if use_bf16_matmul else jnp.float32
    itemsize = jnp.dtype(compute_dtype).itemsize
    cap = _vmem_capacity_bytes()

    # ---- A) fused soft assignment + VLAD aggregation + L2 normalizations ---------------------
    if add_batch_norm:
        p0 = params["bn1_gamma"].reshape(1, K).astype(jnp.float32)
        p1 = params["bn1_beta"].reshape(1, K).astype(jnp.float32)
    else:
        p0 = params["cluster_biases"].reshape(1, K).astype(jnp.float32)
        p1 = jnp.zeros((1, K), jnp.float32)             # unused in this branch
    cw = params["cluster_weights"].astype(jnp.float32)
    cw2 = params["cluster_weights2"].astype(jnp.float32)

    inputs = [x, cw, p0, p1, cw2]
    in_specs = [_full_spec((B, N, C)), _full_spec((C, K)),
                _full_spec((1, K)), _full_spec((1, K)), _full_spec((1, C, K))]
    use_tw = token_weight is not None
    if use_tw:
        tw = token_weight.reshape(B, N).astype(jnp.float32)
        inputs.append(tw)
        in_specs.append(_full_spec((B, N)))

    est_a = 4 * (B * N * C + 3 * B * N * K + 2 * C * K + 3 * B * C * K)
    vlad = pl.pallas_call(
        functools.partial(_assign_vlad_kernel, add_batch_norm=add_batch_norm,
                          use_token_weight=use_tw),
        out_shape=jax.ShapeDtypeStruct((B, C, K), jnp.float32),
        in_specs=in_specs,
        out_specs=_full_spec((B, C, K)),
        compiler_params=pltpu.CompilerParams(vmem_limit_bytes=_vmem_limit(est_a, cap)),
    )(*inputs)
    # Free XLA reshape of contiguous trailing dims; same c*K+k order as torch .view.
    vflat = vlad.reshape(B, CK).astype(compute_dtype)    # one-time LHS cast for stage B

    # ---- B) h = BN2(vflat @ hidden1_weights): stream lane-dense weight column tiles ----------
    w1 = params["hidden1_weights"].astype(compute_dtype)
    tn1 = _pick_col_tile(Dout, CK, B, itemsize, cap)
    steps1 = Dout // tn1
    w1_spec = (pl.BlockSpec((CK, tn1), lambda j: (0, j), pipeline_mode=pl.Buffered(3))
               if steps1 >= 3 else pl.BlockSpec((CK, tn1), lambda j: (0, j)))
    est_b = 2 * B * CK * itemsize + 3 * CK * tn1 * itemsize + 2 * B * tn1 * 4
    h = pl.pallas_call(
        _hidden_bn2_kernel,
        grid=(steps1,),
        out_shape=jax.ShapeDtypeStruct((B, Dout), jnp.float32),
        in_specs=[pl.BlockSpec((B, CK), lambda j: (0, 0)),       # resident matmul LHS
                  w1_spec,                                       # streamed weight columns
                  pl.BlockSpec((1, tn1), lambda j: (0, j)),
                  pl.BlockSpec((1, tn1), lambda j: (0, j))],
        out_specs=pl.BlockSpec((B, tn1), lambda j: (0, j)),
        compiler_params=pltpu.CompilerParams(
            dimension_semantics=("parallel",),
            vmem_limit_bytes=_vmem_limit(est_b, cap)),
    )(vflat, w1,
      params["bn2_gamma"].reshape(1, Dout).astype(jnp.float32),
      params["bn2_beta"].reshape(1, Dout).astype(jnp.float32))
    if not gating:
        return h

    # ---- C) context gating: out = h * sigmoid(BN(h @ gating_weights)) ------------------------
    if add_batch_norm:
        g0 = params["gating_bn_gamma"].reshape(1, Dout).astype(jnp.float32)
        g1 = params["gating_bn_beta"].reshape(1, Dout).astype(jnp.float32)
    else:
        g0 = params["gating_biases"].reshape(1, Dout).astype(jnp.float32)
        g1 = jnp.zeros((1, Dout), jnp.float32)           # unused in this branch
    wg = params["gating_weights"].astype(compute_dtype)
    h_lhs = h.astype(compute_dtype)                      # one-time LHS cast (no-op in f32 mode)
    tn2 = _pick_col_tile(Dout, Dout, B, itemsize, cap)
    steps2 = Dout // tn2
    wg_spec = (pl.BlockSpec((Dout, tn2), lambda j: (0, j), pipeline_mode=pl.Buffered(3))
               if steps2 >= 3 else pl.BlockSpec((Dout, tn2), lambda j: (0, j)))
    est_c = 2 * B * Dout * itemsize + 3 * Dout * tn2 * itemsize + 2 * B * tn2 * 4
    out = pl.pallas_call(
        functools.partial(_gating_kernel, add_batch_norm=add_batch_norm, tn=tn2),
        grid=(steps2,),
        out_shape=jax.ShapeDtypeStruct((B, Dout), jnp.float32),
        in_specs=[pl.BlockSpec((B, Dout), lambda j: (0, 0)),     # single resident h stream
                  wg_spec,                                       # streamed gating weight columns
                  pl.BlockSpec((1, tn2), lambda j: (0, j)),
                  pl.BlockSpec((1, tn2), lambda j: (0, j))],
        out_specs=pl.BlockSpec((B, tn2), lambda j: (0, j)),
        compiler_params=pltpu.CompilerParams(
            dimension_semantics=("parallel",),
            vmem_limit_bytes=_vmem_limit(est_c, cap)),
    )(h_lhs, wg, g0, g1)
    return out


# --------------------------------------------------------------------------------------------
# pure-JAX reference (training-mode BN), matmuls at HIGHEST precision
# --------------------------------------------------------------------------------------------
def _netvlad_ref(x, params, *, add_batch_norm=True, gating=True):
    hp = jax.lax.Precision.HIGHEST
    B, N, C = x.shape
    K = params["cluster_weights"].shape[1]
    act = jnp.einsum("bnc,ck->bnk", x, params["cluster_weights"], precision=hp)
    if add_batch_norm:
        a2 = act.reshape(-1, K)
        mean = a2.mean(0, keepdims=True)
        var = ((a2 - mean) ** 2).mean(0, keepdims=True)
        a2 = (a2 - mean) / jnp.sqrt(var + _BN_EPS) * params["bn1_gamma"] + params["bn1_beta"]
        act = a2.reshape(B, N, K)
    else:
        act = act + params["cluster_biases"]
    act = jax.nn.softmax(act, axis=-1)
    a = act.sum(axis=1, keepdims=True) * params["cluster_weights2"]            # (B, C, K)
    vlad = jnp.einsum("bnk,bnc->bck", act, x, precision=hp) - a                # (B, C, K)
    vlad = vlad / jnp.maximum(jnp.linalg.norm(vlad, axis=1, keepdims=True), _L2_EPS)
    vlad = vlad.reshape(B, C * K)
    vlad = vlad / jnp.maximum(jnp.linalg.norm(vlad, axis=1, keepdims=True), _L2_EPS)
    h = jnp.dot(vlad, params["hidden1_weights"], precision=hp)
    mean = h.mean(0, keepdims=True)
    var = ((h - mean) ** 2).mean(0, keepdims=True)
    h = (h - mean) / jnp.sqrt(var + _BN_EPS) * params["bn2_gamma"] + params["bn2_beta"]
    if gating:
        g = jnp.dot(h, params["gating_weights"], precision=hp)
        if add_batch_norm:
            gm = g.mean(0, keepdims=True)
            gv = ((g - gm) ** 2).mean(0, keepdims=True)
            g = (g - gm) / jnp.sqrt(gv + _BN_EPS) * params["gating_bn_gamma"] + params["gating_bn_beta"]
        else:
            g = g + params["gating_biases"]
        h = h * jax.nn.sigmoid(g)
    return h


if __name__ == "__main__":
    # Small shapes consistent with the module: batch=8 sets of 8 tokens,
    # feature_size=32, num_clusters=8, output_dim=32, work_with_tokens=True.
    B, N, C, K, Dout = 8, 8, 32, 8, 32
    key = jax.random.PRNGKey(0)
    ks = jax.random.split(key, 7)
    x = jax.random.normal(ks[0], (B, N, C), dtype=jnp.float32)
    params = {
        "cluster_weights": jax.random.normal(ks[1], (C, K), jnp.float32) / math.sqrt(C),
        "cluster_weights2": jax.random.normal(ks[2], (1, C, K), jnp.float32) / math.sqrt(C),
        "hidden1_weights": jax.random.normal(ks[3], (C * K, Dout), jnp.float32) / math.sqrt(C),
        "bn1_gamma": jnp.ones((K,), jnp.float32),
        "bn1_beta": jnp.zeros((K,), jnp.float32),
        "cluster_biases": jax.random.normal(ks[4], (K,), jnp.float32) / math.sqrt(C),
        "bn2_gamma": jnp.ones((Dout,), jnp.float32),
        "bn2_beta": jnp.zeros((Dout,), jnp.float32),
        "gating_weights": jax.random.normal(ks[5], (Dout, Dout), jnp.float32) / math.sqrt(Dout),
        "gating_bn_gamma": jnp.ones((Dout,), jnp.float32),
        "gating_bn_beta": jnp.zeros((Dout,), jnp.float32),
        "gating_biases": jax.random.normal(ks[6], (Dout,), jnp.float32) / math.sqrt(Dout),
    }

    fwd = jax.jit(netvlad_loupe_forward,
                  static_argnames=("add_batch_norm", "gating", "work_with_tokens",
                                   "use_bf16_matmul"))

    # Default path (add_batch_norm=True, gating=True, f32 matmuls).
    # Tolerance covers MXU multi-pass f32 vs HIGHEST-precision reference.
    out = fwd(x, params, add_batch_norm=True, gating=True)
    jax.block_until_ready(out)
    ref = _netvlad_ref(x, params, add_batch_norm=True, gating=True)
    assert out.shape == (B, Dout)
    assert jnp.allclose(out, ref, atol=1e-3, rtol=1e-3), float(jnp.max(jnp.abs(out - ref)))

    # add_batch_norm=False branch (cluster_biases + gating_biases; bn2 still applied).
    out_nb = fwd(x, params, add_batch_norm=False, gating=True)
    jax.block_until_ready(out_nb)
    ref_nb = _netvlad_ref(x, params, add_batch_norm=False, gating=True)
    assert jnp.allclose(out_nb, ref_nb, atol=1e-3, rtol=1e-3), float(jnp.max(jnp.abs(out_nb - ref_nb)))

    # bf16 streaming path (halves HBM traffic of the big weights + LHS); loose tolerance vs f32 ref.
    out_bf16 = fwd(x, params, add_batch_norm=True, gating=True, use_bf16_matmul=True)
    jax.block_until_ready(out_bf16)
    assert jnp.allclose(out_bf16, ref, atol=1.5e-1, rtol=1.5e-1), float(jnp.max(jnp.abs(out_bf16 - ref)))

    print("KERNEL_OK")
</pallas_src>

<mosaic_0001>
module attributes {stable_mosaic.version = 11 : i64} {
  func.func @_assign_vlad_kernel(%arg0: memref<8x8x32xf32, #tpu.memory_space<vmem>>, %arg1: memref<32x8xf32, #tpu.memory_space<vmem>>, %arg2: memref<1x8xf32, #tpu.memory_space<vmem>>, %arg3: memref<1x8xf32, #tpu.memory_space<vmem>>, %arg4: memref<1x32x8xf32, #tpu.memory_space<vmem>>, %arg5: memref<8x32x8xf32, #tpu.memory_space<vmem>>) attributes {dimension_semantics = [], scalar_prefetch = 0 : i64, scratch_operands = 0 : i64, tpu.core_type = #tpu.core_type<tc>} {
    %c0 = arith.constant 0 : index
    %c0_0 = arith.constant 0 : index
    %c0_1 = arith.constant 0 : index
    %0 = vector.load %arg0[%c0, %c0_0, %c0_1] : memref<8x8x32xf32, #tpu.memory_space<vmem>>, vector<8x8x32xf32>
    %1 = vector.shape_cast %0 : vector<8x8x32xf32> to vector<64x32xf32>
    %c0_2 = arith.constant 0 : index
    %c0_3 = arith.constant 0 : index
    %2 = vector.load %arg1[%c0_2, %c0_3] : memref<32x8xf32, #tpu.memory_space<vmem>>, vector<32x8xf32>
    %cst = arith.constant dense<0.000000e+00> : vector<64x8xf32>
    %3 = tpu.matmul %1, %2, %cst {dimension_numbers = #tpu.dot_dimension_numbers<[1], [0], [0], [1], [0, 0, 1, 1], [], []>} : vector<64x32xf32>, vector<32x8xf32>, vector<64x8xf32> -> vector<64x8xf32>
    %c0_4 = arith.constant 0 : index
    %c0_5 = arith.constant 0 : index
    %4 = vector.load %arg2[%c0_4, %c0_5] : memref<1x8xf32, #tpu.memory_space<vmem>>, vector<1x8xf32>
    %c0_6 = arith.constant 0 : index
    %c0_7 = arith.constant 0 : index
    %5 = vector.load %arg3[%c0_6, %c0_7] : memref<1x8xf32, #tpu.memory_space<vmem>>, vector<1x8xf32>
    %cst_8 = arith.constant dense<0.000000e+00> : vector<8xf32>
    %6 = vector.multi_reduction <add>, %3, %cst_8 [0] : vector<64x8xf32> to vector<8xf32>
    %7 = vector.shape_cast %6 : vector<8xf32> to vector<1x8xf32>
    %cst_9 = arith.constant 6.400000e+01 : f32
    %8 = vector.broadcast %cst_9 : f32 to vector<1x8xf32>
    %9 = arith.divf %7, %8 : vector<1x8xf32>
    %10 = vector.broadcast %9 : vector<1x8xf32> to vector<64x8xf32>
    %11 = arith.subf %3, %10 : vector<64x8xf32>
    %12 = arith.mulf %11, %11 : vector<64x8xf32>
    %cst_10 = arith.constant dense<0.000000e+00> : vector<8xf32>
    %13 = vector.multi_reduction <add>, %12, %cst_10 [0] : vector<64x8xf32> to vector<8xf32>
    %14 = vector.shape_cast %13 : vector<8xf32> to vector<1x8xf32>
    %cst_11 = arith.constant 6.400000e+01 : f32
    %15 = vector.broadcast %cst_11 : f32 to vector<1x8xf32>
    %16 = arith.divf %14, %15 : vector<1x8xf32>
    %cst_12 = arith.constant 9.99999974E-6 : f32
    %17 = vector.broadcast %cst_12 : f32 to vector<1x8xf32>
    %18 = arith.addf %16, %17 : vector<1x8xf32>
    %19 = math.rsqrt %18 : vector<1x8xf32>
    %20 = arith.mulf %4, %19 : vector<1x8xf32>
    %21 = vector.broadcast %9 : vector<1x8xf32> to vector<64x8xf32>
    %22 = arith.subf %3, %21 : vector<64x8xf32>
    %23 = vector.broadcast %20 : vector<1x8xf32> to vector<64x8xf32>
    %24 = arith.mulf %22, %23 : vector<64x8xf32>
    %25 = vector.broadcast %5 : vector<1x8xf32> to vector<64x8xf32>
    %26 = arith.addf %24, %25 : vector<64x8xf32>
    %cst_13 = arith.constant dense<0xFF800000> : vector<64xf32>
    %27 = vector.multi_reduction <maximumf>, %26, %cst_13 [1] : vector<64x8xf32> to vector<64xf32>
    %28 = vector.shape_cast %27 : vector<64xf32> to vector<64x1xf32>
    %29 = vector.broadcast %28 : vector<64x1xf32> to vector<64x8xf32>
    %30 = arith.subf %26, %29 : vector<64x8xf32>
    %31 = math.exp %30 : vector<64x8xf32>
    %cst_14 = arith.constant dense<0.000000e+00> : vector<64xf32>
    %32 = vector.multi_reduction <add>, %31, %cst_14 [1] : vector<64x8xf32> to vector<64xf32>
    %33 = vector.shape_cast %32 : vector<64xf32> to vector<64x1xf32>
    %34 = vector.broadcast %33 : vector<64x1xf32> to vector<64x8xf32>
    %35 = arith.divf %31, %34 : vector<64x8xf32>
    %36 = vector.shape_cast %35 : vector<64x8xf32> to vector<8x8x8xf32>
    "tpu.trace_start"() <{level = 10 : i32, message = "bnc,bnk->bck"}> : () -> ()
    %cst_15 = arith.constant dense<0.000000e+00> : vector<8x32x8xf32>
    %37 = tpu.matmul %0, %36, %cst_15 {dimension_numbers = #tpu.dot_dimension_numbers<[1], [1], [2], [2], [0, 0, 0, 2, 1, 2], [0], [0]>} : vector<8x8x32xf32>, vector<8x8x8xf32>, vector<8x32x8xf32> -> vector<8x32x8xf32>
    "tpu.trace_stop"() : () -> ()
    %cst_16 = arith.constant dense<0.000000e+00> : vector<8x8xf32>
    %38 = vector.multi_reduction <add>, %36, %cst_16 [1] : vector<8x8x8xf32> to vector<8x8xf32>
    %39 = vector.shape_cast %38 : vector<8x8xf32> to vector<8x1x8xf32>
    %c0_17 = arith.constant 0 : index
    %c0_18 = arith.constant 0 : index
    %c0_19 = arith.constant 0 : index
    %40 = vector.load %arg4[%c0_17, %c0_18, %c0_19] : memref<1x32x8xf32, #tpu.memory_space<vmem>>, vector<1x32x8xf32>
    %41 = vector.broadcast %39 : vector<8x1x8xf32> to vector<8x32x8xf32>
    %42 = vector.broadcast %40 : vector<1x32x8xf32> to vector<8x32x8xf32>
    %43 = arith.mulf %41, %42 : vector<8x32x8xf32>
    %44 = arith.subf %37, %43 : vector<8x32x8xf32>
    %45 = arith.mulf %44, %44 : vector<8x32x8xf32>
    %cst_20 = arith.constant dense<0.000000e+00> : vector<8x8xf32>
    %46 = vector.multi_reduction <add>, %45, %cst_20 [1] : vector<8x32x8xf32> to vector<8x8xf32>
    %47 = vector.shape_cast %46 : vector<8x8xf32> to vector<8x1x8xf32>
    %48 = math.sqrt %47 : vector<8x1x8xf32>
    %cst_21 = arith.constant 9.99999996E-13 : f32
    %49 = vector.broadcast %cst_21 : f32 to vector<8x1x8xf32>
    %50 = arith.maximumf %48, %49 : vector<8x1x8xf32>
    %51 = vector.broadcast %50 : vector<8x1x8xf32> to vector<8x32x8xf32>
    %52 = arith.divf %44, %51 : vector<8x32x8xf32>
    %53 = arith.mulf %52, %52 : vector<8x32x8xf32>
    %cst_22 = arith.constant dense<0.000000e+00> : vector<8x8xf32>
    %54 = vector.multi_reduction <add>, %53, %cst_22 [1] : vector<8x32x8xf32> to vector<8x8xf32>
    %55 = vector.shape_cast %54 : vector<8x8xf32> to vector<8x1x8xf32>
    %cst_23 = arith.constant dense<0.000000e+00> : vector<8x1xf32>
    %56 = vector.multi_reduction <add>, %55, %cst_23 [2] : vector<8x1x8xf32> to vector<8x1xf32>
    %57 = vector.shape_cast %56 : vector<8x1xf32> to vector<8x1x1xf32>
    %58 = math.sqrt %57 : vector<8x1x1xf32>
    %cst_24 = arith.constant 9.99999996E-13 : f32
    %59 = vector.broadcast %cst_24 : f32 to vector<8x1x1xf32>
    %60 = arith.maximumf %58, %59 : vector<8x1x1xf32>
    %61 = vector.broadcast %60 : vector<8x1x1xf32> to vector<8x32x8xf32>
    %62 = arith.divf %52, %61 : vector<8x32x8xf32>
    %c0_25 = arith.constant 0 : index
    %c0_26 = arith.constant 0 : index
    %c0_27 = arith.constant 0 : index
    %63 = vector.load %arg5[%c0_25, %c0_26, %c0_27] : memref<8x32x8xf32, #tpu.memory_space<vmem>>, vector<8x32x8xf32>
    tpu.vector_store %arg5[%c0_25, %c0_26, %c0_27], %62 {strides = array<i32>} : memref<8x32x8xf32, #tpu.memory_space<vmem>>, vector<8x32x8xf32>,
    return
  }
}

module attributes {stable_mosaic.version = 11 : i64} {
  func.func @_gating_kernel(%arg0: i32, %arg1: memref<8x32xf32, #tpu.memory_space<vmem>>, %arg2: memref<32x32xf32, #tpu.memory_space<vmem>>, %arg3: memref<1x32xf32, #tpu.memory_space<vmem>>, %arg4: memref<1x32xf32, #tpu.memory_space<vmem>>, %arg5: memref<8x32xf32, #tpu.memory_space<vmem>>) attributes {dimension_semantics = [#tpu.dimension_semantics<parallel>], iteration_bounds = array<i64: 1>, scalar_prefetch = 0 : i64, scratch_operands = 0 : i64, tpu.core_type = #tpu.core_type<tc>, window_params = [{pipeline_mode = #tpu.pipeline_mode<synchronous>, transform_indices = @transform_0, window_bounds = array<i64: 8, 32>}, {transform_indices = @transform_1, window_bounds = array<i64: 32, 32>}, {transform_indices = @transform_2, window_bounds = array<i64: 1, 32>}, {transform_indices = @transform_3, window_bounds = array<i64: 1, 32>}, {transform_indices = @transform_4, window_bounds = array<i64: 8, 32>}]} {
    %c0 = arith.constant 0 : index
    %c0_0 = arith.constant 0 : index
    %0 = vector.load %arg1[%c0, %c0_0] : memref<8x32xf32, #tpu.memory_space<vmem>>, vector<8x32xf32>
    %c0_1 = arith.constant 0 : index
    %c0_2 = arith.constant 0 : index
    %1 = vector.load %arg2[%c0_1, %c0_2] : memref<32x32xf32, #tpu.memory_space<vmem>>, vector<32x32xf32>
    %cst = arith.constant dense<0.000000e+00> : vector<8x32xf32>
    %2 = tpu.matmul %0, %1, %cst {dimension_numbers = #tpu.dot_dimension_numbers<[1], [0], [0], [1], [0, 0, 1, 1], [], []>} : vector<8x32xf32>, vector<32x32xf32>, vector<8x32xf32> -> vector<8x32xf32>
    %c0_3 = arith.constant 0 : index
    %c0_4 = arith.constant 0 : index
    %3 = vector.load %arg3[%c0_3, %c0_4] : memref<1x32xf32, #tpu.memory_space<vmem>>, vector<1x32xf32>
    %c0_5 = arith.constant 0 : index
    %c0_6 = arith.constant 0 : index
    %4 = vector.load %arg4[%c0_5, %c0_6] : memref<1x32xf32, #tpu.memory_space<vmem>>, vector<1x32xf32>
    %cst_7 = arith.constant dense<0.000000e+00> : vector<32xf32>
    %5 = vector.multi_reduction <add>, %2, %cst_7 [0] : vector<8x32xf32> to vector<32xf32>
    %6 = vector.shape_cast %5 : vector<32xf32> to vector<1x32xf32>
    %cst_8 = arith.constant 8.000000e+00 : f32
    %7 = vector.broadcast %cst_8 : f32 to vector<1x32xf32>
    %8 = arith.divf %6, %7 : vector<1x32xf32>
    %9 = vector.broadcast %8 : vector<1x32xf32> to vector<8x32xf32>
    %10 = arith.subf %2, %9 : vector<8x32xf32>
    %11 = arith.mulf %10, %10 : vector<8x32xf32>
    %cst_9 = arith.constant dense<0.000000e+00> : vector<32xf32>
    %12 = vector.multi_reduction <add>, %11, %cst_9 [0] : vector<8x32xf32> to vector<32xf32>
    %13 = vector.shape_cast %12 : vector<32xf32> to vector<1x32xf32>
    %cst_10 = arith.constant 8.000000e+00 : f32
    %14 = vector.broadcast %cst_10 : f32 to vector<1x32xf32>
    %15 = arith.divf %13, %14 : vector<1x32xf32>
    %cst_11 = arith.constant 9.99999974E-6 : f32
    %16 = vector.broadcast %cst_11 : f32 to vector<1x32xf32>
    %17 = arith.addf %15, %16 : vector<1x32xf32>
    %18 = math.rsqrt %17 : vector<1x32xf32>
    %19 = arith.mulf %3, %18 : vector<1x32xf32>
    %20 = vector.broadcast %8 : vector<1x32xf32> to vector<8x32xf32>
    %21 = arith.subf %2, %20 : vector<8x32xf32>
    %22 = vector.broadcast %19 : vector<1x32xf32> to vector<8x32xf32>
    %23 = arith.mulf %21, %22 : vector<8x32xf32>
    %24 = vector.broadcast %4 : vector<1x32xf32> to vector<8x32xf32>
    %25 = arith.addf %23, %24 : vector<8x32xf32>
    %26 = arith.negf %25 : vector<8x32xf32>
    %27 = math.exp %26 : vector<8x32xf32>
    %cst_12 = arith.constant 1.000000e+00 : f32
    %28 = vector.broadcast %cst_12 : f32 to vector<8x32xf32>
    %29 = arith.addf %28, %27 : vector<8x32xf32>
    %30 = arith.divf %28, %29 : vector<8x32xf32>
    %31 = arith.mulf %0, %30 : vector<8x32xf32>
    %c0_13 = arith.constant 0 : index
    %c0_14 = arith.constant 0 : index
    %32 = vector.load %arg5[%c0_13, %c0_14] : memref<8x32xf32, #tpu.memory_space<vmem>>, vector<8x32xf32>
    tpu.vector_store %arg5[%c0_13, %c0_14], %31 {strides = array<i32>} : memref<8x32xf32, #tpu.memory_space<vmem>>, vector<8x32xf32>,
    return
  }
  func.func @transform_0(%arg0: i32) -> (i32, i32) {
    %c0_i32 = arith.constant 0 : i32
    %c0_i32_0 = arith.constant 0 : i32
    %c0_i32_1 = arith.constant 0 : i32
    return %c0_i32, %c0_i32_0 : i32, i32
  }
  func.func @transform_1(%arg0: i32) -> (i32, i32) {
    %c0_i32 = arith.constant 0 : i32
    %c0_i32_0 = arith.constant 0 : i32
    return %c0_i32, %arg0 : i32, i32
  }
  func.func @transform_2(%arg0: i32) -> (i32, i32) {
    %c0_i32 = arith.constant 0 : i32
    %c0_i32_0 = arith.constant 0 : i32
    return %c0_i32, %arg0 : i32, i32
  }
  func.func @transform_3(%arg0: i32) -> (i32, i32) {
    %c0_i32 = arith.constant 0 : i32
    %c0_i32_0 = arith.constant 0 : i32
    return %c0_i32, %arg0 : i32, i32
  }
  func.func @transform_4(%arg0: i32) -> (i32, i32) {
    %c0_i32 = arith.constant 0 : i32
    %c0_i32_0 = arith.constant 0 : i32
    return %c0_i32, %arg0 : i32, i32
  }
}

module attributes {stable_mosaic.version = 11 : i64} {
  func.func @_hidden_bn2_kernel(%arg0: i32, %arg1: memref<8x256xf32, #tpu.memory_space<vmem>>, %arg2: memref<256x32xf32, #tpu.memory_space<vmem>>, %arg3: memref<1x32xf32, #tpu.memory_space<vmem>>, %arg4: memref<1x32xf32, #tpu.memory_space<vmem>>, %arg5: memref<8x32xf32, #tpu.memory_space<vmem>>) attributes {dimension_semantics = [#tpu.dimension_semantics<parallel>], iteration_bounds = array<i64: 1>, scalar_prefetch = 0 : i64, scratch_operands = 0 : i64, tpu.core_type = #tpu.core_type<tc>, window_params = [{pipeline_mode = #tpu.pipeline_mode<synchronous>, transform_indices = @transform_0, window_bounds = array<i64: 8, 256>}, {transform_indices = @transform_1, window_bounds = array<i64: 256, 32>}, {transform_indices = @transform_2, window_bounds = array<i64: 1, 32>}, {transform_indices = @transform_3, window_bounds = array<i64: 1, 32>}, {transform_indices = @transform_4, window_bounds = array<i64: 8, 32>}]} {
    %c0 = arith.constant 0 : index
    %c0_0 = arith.constant 0 : index
    %0 = vector.load %arg1[%c0, %c0_0] : memref<8x256xf32, #tpu.memory_space<vmem>>, vector<8x256xf32>
    %c0_1 = arith.constant 0 : index
    %c0_2 = arith.constant 0 : index
    %1 = vector.load %arg2[%c0_1, %c0_2] : memref<256x32xf32, #tpu.memory_space<vmem>>, vector<256x32xf32>
    %cst = arith.constant dense<0.000000e+00> : vector<8x32xf32>
    %2 = tpu.matmul %0, %1, %cst {dimension_numbers = #tpu.dot_dimension_numbers<[1], [0], [0], [1], [0, 0, 1, 1], [], []>} : vector<8x256xf32>, vector<256x32xf32>, vector<8x32xf32> -> vector<8x32xf32>
    %c0_3 = arith.constant 0 : index
    %c0_4 = arith.constant 0 : index
    %3 = vector.load %arg3[%c0_3, %c0_4] : memref<1x32xf32, #tpu.memory_space<vmem>>, vector<1x32xf32>
    %c0_5 = arith.constant 0 : index
    %c0_6 = arith.constant 0 : index
    %4 = vector.load %arg4[%c0_5, %c0_6] : memref<1x32xf32, #tpu.memory_space<vmem>>, vector<1x32xf32>
    %cst_7 = arith.constant dense<0.000000e+00> : vector<32xf32>
    %5 = vector.multi_reduction <add>, %2, %cst_7 [0] : vector<8x32xf32> to vector<32xf32>
    %6 = vector.shape_cast %5 : vector<32xf32> to vector<1x32xf32>
    %cst_8 = arith.constant 8.000000e+00 : f32
    %7 = vector.broadcast %cst_8 : f32 to vector<1x32xf32>
    %8 = arith.divf %6, %7 : vector<1x32xf32>
    %9 = vector.broadcast %8 : vector<1x32xf32> to vector<8x32xf32>
    %10 = arith.subf %2, %9 : vector<8x32xf32>
    %11 = arith.mulf %10, %10 : vector<8x32xf32>
    %cst_9 = arith.constant dense<0.000000e+00> : vector<32xf32>
    %12 = vector.multi_reduction <add>, %11, %cst_9 [0] : vector<8x32xf32> to vector<32xf32>
    %13 = vector.shape_cast %12 : vector<32xf32> to vector<1x32xf32>
    %cst_10 = arith.constant 8.000000e+00 : f32
    %14 = vector.broadcast %cst_10 : f32 to vector<1x32xf32>
    %15 = arith.divf %13, %14 : vector<1x32xf32>
    %cst_11 = arith.constant 9.99999974E-6 : f32
    %16 = vector.broadcast %cst_11 : f32 to vector<1x32xf32>
    %17 = arith.addf %15, %16 : vector<1x32xf32>
    %18 = math.rsqrt %17 : vector<1x32xf32>
    %19 = arith.mulf %3, %18 : vector<1x32xf32>
    %20 = vector.broadcast %8 : vector<1x32xf32> to vector<8x32xf32>
    %21 = arith.subf %2, %20 : vector<8x32xf32>
    %22 = vector.broadcast %19 : vector<1x32xf32> to vector<8x32xf32>
    %23 = arith.mulf %21, %22 : vector<8x32xf32>
    %24 = vector.broadcast %4 : vector<1x32xf32> to vector<8x32xf32>
    %25 = arith.addf %23, %24 : vector<8x32xf32>
    %c0_12 = arith.constant 0 : index
    %c0_13 = arith.constant 0 : index
    %26 = vector.load %arg5[%c0_12, %c0_13] : memref<8x32xf32, #tpu.memory_space<vmem>>, vector<8x32xf32>
    tpu.vector_store %arg5[%c0_12, %c0_13], %25 {strides = array<i32>} : memref<8x32xf32, #tpu.memory_space<vmem>>, vector<8x32xf32>,
    return
  }
  func.func @transform_0(%arg0: i32) -> (i32, i32) {
    %c0_i32 = arith.constant 0 : i32
    %c0_i32_0 = arith.constant 0 : i32
    %c0_i32_1 = arith.constant 0 : i32
    return %c0_i32, %c0_i32_0 : i32, i32
  }
  func.func @transform_1(%arg0: i32) -> (i32, i32) {
    %c0_i32 = arith.constant 0 : i32
    %c0_i32_0 = arith.constant 0 : i32
    return %c0_i32, %arg0 : i32, i32
  }
  func.func @transform_2(%arg0: i32) -> (i32, i32) {
    %c0_i32 = arith.constant 0 : i32
    %c0_i32_0 = arith.constant 0 : i32
    return %c0_i32, %arg0 : i32, i32
  }
  func.func @transform_3(%arg0: i32) -> (i32, i32) {
    %c0_i32 = arith.constant 0 : i32
    %c0_i32_0 = arith.constant 0 : i32
    return %c0_i32, %arg0 : i32, i32
  }
  func.func @transform_4(%arg0: i32) -> (i32, i32) {
    %c0_i32 = arith.constant 0 : i32
    %c0_i32_0 = arith.constant 0 : i32
    return %c0_i32, %arg0 : i32, i32
  }
}

</mosaic_0001>

<bundles_post_ra>
// kernel: netvlad_loupe_forward.5
= control target key start
LH: loop header
LB: loop body
LE: loop exit
PB: predicated region body
PF: predicated region fallthrough
CT: control target
= control target key end

     0   :  { %v216_v3 = vmov 0.0|0.0   ;;  %vm217_vm0 = vmmov 0   ;;  %v218_v6 = vmov 0.0   ;;  %s282_s0 = inlined_call_operand.vmem [shape: f32[8,32], index: 0, kind: input, shape index: {}]   ;;  %s283_s1 = inlined_call_operand.vmem [shape: f32[32,32], index: 1, kind: input, shape index: {}]   ;;  %s284_s2 = inlined_call_operand.vmem [shape: f32[1,32], index: 2, kind: input, shape index: {}]   ;;  %s285_s3 = inlined_call_operand.vmem [shape: f32[1,32], index: 3, kind: input, shape index: {}]   ;;  %s286_s4 = inlined_call_operand.hbm [shape: f32[8,32], index: 4, kind: output, shape index: {}]  }
   0x1   :  { %v19_v0 = vld [vmem:[%s283_s1] sm:$0xff]  ;;  %v20_v1 = vld [vmem:[%s283_s1 + $0x8] sm:$0xff]  ;;  %v21_v2 = vld [vmem:[%s283_s1 + $0x10] sm:$0xff]  ;;  %176 = vmatprep.subr.bf16.mxu0 %v216_v3  ;;  %173 = vmatprep.mubr.msk.f32.mxu0 %vm217_vm0, %v218_v6 }
   0x2   :  { %v177_v4 = vpack.c.bf16 %v20_v1, %v19_v0  ;;  %v22_v5 = vld [vmem:[%s283_s1 + $0x18] sm:$0xff] }
   0x3   :  { %9 = vsyncpa [#allocation3], 0  ;;  %v180_v7 = vpack.c.bf16 %v22_v5, %v21_v2  ;;  %v18_v8 = vld [vmem:[%s282_s0] sm:$0xff]  ;;  %vm23_vm1 = vcmask 261120   ;;  %v122_v30 = vlaneseq  ;;  %s219_s27 = smov [#allocation2]  }
   0x4   :  { %178 = vmatpush3.bf16.msra.mxu0 %v177_v4  ;;  %v97_v32 = vld [vmem:[%s284_s2] sm:$0x1]  ;;  %s149_s28 = sshll.u32 %s219_s27, 4  ;;  %s150_s28 = int_to_ptr.vmem [resolvable:$true] %s149_s28 }
   0x5   :  { %179 = vmatprep.subr.bf16.mxu0 %v216_v3  ;;  %v123_v31 = vshrl.u32 %v122_v30, 7  ;;  %v158_v37 = vld [vmem:[%s285_s3] ss:$0 sm:$0xff]  ;;  %s192_s2 = scalar_lea.vmem %s150_s28, 128  ;;  %p197_p1 = scmp.lt.s32.totalorder %s150_s28, %s150_s28 }
   0x6   :  { %p193_p0 = scmp.ne.s32.totalorder %s150_s28, %s192_s2  ;;  %p198_p2 = scmp.lt.s32.totalorder %s192_s2, %s192_s2 }
   0x7   :  { %v124_v33 = vsub.s32 0, %v123_v31 }
   0x8   :  { %181 = vmatpush3.bf16.msra.mxu0 %v180_v7  ;;  %p199_p3 = por %p198_p2, %p197_p1 }
   0xa   :  { %p200_p4 = pnand %p199_p3, %p193_p0 }
   0xb   :  { %174 = vmatmul.mubr.msk.f32.vlgmr.msra.gmra.mrb[0].mxu0 %vm23_vm1, %v18_v8 }
  0xde   :  { %v93_v9 = vpop.f32.mrb[0].mxu0 }
  0xdf   :  { %v99_v10 = vsel %vm23_vm1, %v93_v9, 0.0  ;;  %v175_v11 = vpop.f32.mrb[1].mxu0 }
  0xe0   :  { %v100_v12 = vrot.slane %v99_v10, 4 }
  0xe2   :  { %v101_v13 = vadd.f32 %v100_v12, %v99_v10 }
  0xe4   :  { %v102_v14 = vrot.slane %v101_v13, 2 }
  0xe6   :  { %v103_v15 = vadd.f32 %v102_v14, %v101_v13 }
  0xe8   :  { %v104_v16 = vrot.slane %v103_v15, 1 }
  0xea   :  { %v105_v17 = vadd.f32 %v104_v16, %v103_v15 }
  0xec   :  { %v107_v18 = vmul.f32 0.125, %v105_v17 }
  0xee   :  { %v108_v19 = vsub.f32 %v93_v9, %v107_v18 }
  0xf0   :  { %v109_v20 = vmul.f32 %v108_v19, %v108_v19 }
  0xf2   :  { %v110_v21 = vsel %vm23_vm1, %v109_v20, 0.0 }
  0xf3   :  { %v111_v22 = vrot.slane %v110_v21, 4 }
  0xf5   :  { %v112_v23 = vadd.f32 %v111_v22, %v110_v21 }
  0xf7   :  { %v113_v24 = vrot.slane %v112_v23, 2 }
  0xf9   :  { %v114_v25 = vadd.f32 %v113_v24, %v112_v23 }
  0xfb   :  { %v115_v26 = vrot.slane %v114_v25, 1 }
  0xfd   :  { %v116_v27 = vadd.f32 %v115_v26, %v114_v25 }
  0xff   :  { %v117_v28 = vmul.f32 0.125, %v116_v27 }
 0x101   :  { %v118_v29 = vadd.f32 1e-05, %v117_v28 }
 0x103   :  { %186 = vrsqrt.f32 %v118_v29 }
 0x10d   :  { %v187_v34 = vpop.eup %186 }
 0x10e   :  { %v120_v35 = vmul.f32 %v187_v34, %v97_v32 }
 0x110   :  { %v125_v36 = vrot.slane %v120_v35, %v124_v33 }
 0x112   :  { %v127_v38 = vmul.f32 %v125_v36, %v108_v19 }
 0x114   :  { %v134_v39 = vadd.f32 %v158_v37, %v127_v38 }
 0x116   :  { %v159_v40 = vmul.f32 -1.442695, %v134_v39 }
 0x118   :  { %188 = vpow2.f32 %v159_v40 }
 0x122   :  { %v189_v41 = vpop.eup %188 }
 0x123   :  { %v138_v42 = vadd.f32 1.0, %v189_v41 }
 0x125   :  { %190 = vrcp.f32 %v138_v42 }
 0x12f   :  { %v191_v43 = vpop.eup %190 }
 0x130   :  { %v141_v44 = vmul.f32 %v191_v43, %v18_v8 }
 0x132   :  { %142 = vst.msk [vmem:[#allocation2] sm:$0xff] %vm23_vm1, %v141_v44 }
 0x133   :  { %203 = shalt.err (!%p200_p4)
}
 0x134   :  { %s204_s30 = scalar_lea.hbm %s286_s4, 128 }
 0x135   :  { %p205_p5 = scmp.ne.s32.totalorder %s286_s4, %s204_s30  ;;  %p208_p6 = scmp.lt.u32.totalorder %s204_s30, %s286_s4 }
 0x137   :  { %p210_p7 = pnand %p208_p6, %p205_p5 }
 0x139   :  { %213 = shalt.err (!%p210_p7)
}
 0x13a   :  { %152 = dma.vmem_to_hbm [thread:$0]  %s150_s28, 128, %s286_s4, [#allocation3]  }
 0x13b   :  { %214 = dma.done.wait [#allocation3], 128  }
 0x13c   :  { %215 = vsyncadd [#allocation3], 4294967168 }
 0x13d   :  { %156 = vsyncpa [#allocation3], 1 }

// kernel: netvlad_loupe_forward.4
= control target key start
LH: loop header
LB: loop body
LE: loop exit
PB: predicated region body
PF: predicated region fallthrough
CT: control target
= control target key end

     0   :  { %vm123_vm0 = vcmask 261120   ;;  %s374_s1 = inlined_call_operand.vmem [shape: f32[256,32], index: 1, kind: input, shape index: {}]   ;;  %s375_s0 = inlined_call_operand.vmem [shape: f32[8,256], index: 0, kind: input, shape index: {}]   ;;  %s376_s2 = inlined_call_operand.vmem [shape: f32[1,32], index: 2, kind: input, shape index: {}]   ;;  %s377_s3 = inlined_call_operand.vmem [shape: f32[1,32], index: 3, kind: input, shape index: {}]   ;;  %s378_s4 = inlined_call_operand.vmem [shape: f32[8,32], index: 4, kind: output, shape index: {}]  }
   0x1   :  { %v35_v0 = vld [vmem:[%s374_s1 + $0x80] sm:$0xff]  ;;  %v36_v1 = vld [vmem:[%s374_s1 + $0x88] sm:$0xff]  ;;  %v37_v5 = vld [vmem:[%s374_s1 + $0x90] sm:$0xff] }
   0x2   :  { %v19_v2 = vld [vmem:[%s374_s1] sm:$0xff]  ;;  %v201_v3 = vpack.c.bf16 %v36_v1, %v35_v0  ;;  %v20_v4 = vld [vmem:[%s374_s1 + $0x8] sm:$0xff]  ;;  %v38_v6 = vld [vmem:[%s374_s1 + $0x98] sm:$0xff] }
   0x3   :  { %v203_v7 = vpack.c.bf16 %v20_v4, %v19_v2  ;;  %v205_v8 = vpack.c.bf16 %v38_v6, %v37_v5  ;;  %v21_v9 = vld [vmem:[%s374_s1 + $0x10] sm:$0xff]  ;;  %v22_v10 = vld [vmem:[%s374_s1 + $0x18] sm:$0xff]  ;;  %v39_v11 = vld [vmem:[%s374_s1 + $0xa0] sm:$0xff] }
   0x4   :  { %202 = vmatprep.subr.bf16.mxu0 %v201_v3  ;;  %v40_v12 = vld [vmem:[%s374_s1 + $0xa8] sm:$0xff]  ;;  %v207_v13 = vpack.c.bf16 %v22_v10, %v21_v9  ;;  %v23_v15 = vld [vmem:[%s374_s1 + $0x20] sm:$0xff]  ;;  %v41_v17 = vld [vmem:[%s374_s1 + $0xb0] sm:$0xff] }
   0x5   :  { %204 = vmatpush3.bf16.msra.mxu0 %v203_v7  ;;  %v209_v14 = vpack.c.bf16 %v40_v12, %v39_v11  ;;  %v24_v16 = vld [vmem:[%s374_s1 + $0x28] sm:$0xff]  ;;  %v42_v18 = vld [vmem:[%s374_s1 + $0xb8] sm:$0xff]  ;;  %v25_v21 = vld [vmem:[%s374_s1 + $0x30] sm:$0xff] }
   0x6   :  { %206 = vmatprep.subr.bf16.mxu0 %v205_v8  ;;  %v211_v19 = vpack.c.bf16 %v24_v16, %v23_v15  ;;  %v213_v20 = vpack.c.bf16 %v42_v18, %v41_v17  ;;  %v26_v22 = vld [vmem:[%s374_s1 + $0x38] sm:$0xff]  ;;  %v43_v23 = vld [vmem:[%s374_s1 + $0xc0] sm:$0xff]  ;;  %v44_v24 = vld [vmem:[%s374_s1 + $0xc8] sm:$0xff]  ;;  %v147_v8 = vlaneseq }
   0x7   :  { %v18_v25 = vld [vmem:[%s375_s0 + $0x8] sm:$0xff]  ;;  %v215_v26 = vpack.c.bf16 %v26_v22, %v25_v21  ;;  %v217_v27 = vpack.c.bf16 %v44_v24, %v43_v23  ;;  %v27_v28 = vld [vmem:[%s374_s1 + $0x40] sm:$0xff]  ;;  %v45_v30 = vld [vmem:[%s374_s1 + $0xd0] sm:$0xff] }
   0x8   :  { %115 = vmatprep.mubr.f32.mxu0 %v18_v25  ;;  %v28_v29 = vld [vmem:[%s374_s1 + $0x48] sm:$0xff]  ;;  %v46_v31 = vld [vmem:[%s374_s1 + $0xd8] sm:$0xff]  ;;  %v29_v34 = vld [vmem:[%s374_s1 + $0x50] sm:$0xff]  ;;  %v148_v9 = vshrl.u32 %v147_v8, 7 }
   0x9   :  { %208 = vmatpush3.bf16.msra.mxu0 %v207_v13  ;;  %v219_v32 = vpack.c.bf16 %v28_v29, %v27_v28  ;;  %v221_v33 = vpack.c.bf16 %v46_v31, %v45_v30  ;;  %v30_v35 = vld [vmem:[%s374_s1 + $0x58] sm:$0xff]  ;;  %v47_v36 = vld [vmem:[%s374_s1 + $0xe0] sm:$0xff]  ;;  %v48_v37 = vld [vmem:[%s374_s1 + $0xe8] sm:$0xff] }
   0xa   :  { %210 = vmatprep.subr.bf16.mxu0 %v209_v14  ;;  %v223_v38 = vpack.c.bf16 %v30_v35, %v29_v34  ;;  %v225_v39 = vpack.c.bf16 %v48_v37, %v47_v36  ;;  %v31_v40 = vld [vmem:[%s374_s1 + $0x60] sm:$0xff]  ;;  %v32_v41 = vld [vmem:[%s374_s1 + $0x68] sm:$0xff]  ;;  %v49_v42 = vld [vmem:[%s374_s1 + $0xf0] sm:$0xff]  ;;  %v149_v11 = vsub.s32 0, %v148_v9 }
   0xb   :  { %v50_v43 = vld [vmem:[%s374_s1 + $0xf8] sm:$0xff]  ;;  %v227_v44 = vpack.c.bf16 %v32_v41, %v31_v40  ;;  %v33_v46 = vld [vmem:[%s374_s1 + $0x70] sm:$0xff]  ;;  %v17_v49 = vld [vmem:[%s375_s0] sm:$0xff] }
   0xc   :  { %v229_v45 = vpack.c.bf16 %v50_v43, %v49_v42  ;;  %v34_v47 = vld [vmem:[%s374_s1 + $0x78] sm:$0xff]  ;;  %v121_v10 = vld [vmem:[%s376_s2] sm:$0x1] }
   0xd   :  { %212 = vmatpush3.bf16.msra.mxu0 %v211_v19  ;;  %v231_v48 = vpack.c.bf16 %v34_v47, %v33_v46  ;;  %v165_v15 = vld [vmem:[%s377_s3] ss:$0 sm:$0xff] }
   0xe   :  { %214 = vmatprep.subr.bf16.mxu0 %v213_v20 }
  0x11   :  { %216 = vmatpush3.bf16.msra.mxu0 %v215_v26 }
  0x12   :  { %218 = vmatprep.subr.bf16.mxu0 %v217_v27 }
  0x15   :  { %220 = vmatpush3.bf16.msra.mxu0 %v219_v32 }
  0x16   :  { %222 = vmatprep.subr.bf16.mxu0 %v221_v33 }
  0x19   :  { %224 = vmatpush3.bf16.msra.mxu0 %v223_v38 }
  0x1a   :  { %226 = vmatprep.subr.bf16.mxu0 %v225_v39 }
  0x1d   :  { %228 = vmatpush3.bf16.msra.mxu0 %v227_v44 }
  0x1e   :  { %230 = vmatprep.subr.bf16.mxu0 %v229_v45 }
  0x21   :  { %232 = vmatpush3.bf16.msra.mxu0 %v231_v48 }
  0x24   :  { %116 = vmatmul.mubr.f32.vlgmr.msra.gmra.mrb[0].mxu0 %v17_v49 }
  0xf7   :  { %v198_v50 = vpop.f32.mrb[0].mxu0 }
  0xf8   :  { %v199_v51 = vpop.f32.mrb[1].mxu0 }
  0xf9   :  { %v200_v52 = vadd.f32 %v199_v51, %v198_v50 }
  0xfb   :  { %v124_v53 = vsel %vm123_vm0, %v200_v52, 0.0 }
  0xfc   :  { %v125_v54 = vrot.slane %v124_v53, 4 }
  0xfe   :  { %v126_v55 = vadd.f32 %v125_v54, %v124_v53 }
 0x100   :  { %v127_v56 = vrot.slane %v126_v55, 2 }
 0x102   :  { %v128_v57 = vadd.f32 %v127_v56, %v126_v55 }
 0x104   :  { %v129_v58 = vrot.slane %v128_v57, 1 }
 0x106   :  { %v130_v59 = vadd.f32 %v129_v58, %v128_v57 }
 0x108   :  { %v132_v60 = vmul.f32 0.125, %v130_v59 }
 0x10a   :  { %v133_v61 = vsub.f32 %v200_v52, %v132_v60 }
 0x10c   :  { %v134_v62 = vmul.f32 %v133_v61, %v133_v61 }
 0x10e   :  { %v135_v63 = vsel %vm123_vm0, %v134_v62, 0.0 }
 0x10f   :  { %v136_v0 = vrot.slane %v135_v63, 4 }
 0x111   :  { %v137_v1 = vadd.f32 %v136_v0, %v135_v63 }
 0x113   :  { %v138_v2 = vrot.slane %v137_v1, 2 }
 0x115   :  { %v139_v3 = vadd.f32 %v138_v2, %v137_v1 }
 0x117   :  { %v140_v4 = vrot.slane %v139_v3, 1 }
 0x119   :  { %v141_v5 = vadd.f32 %v140_v4, %v139_v3 }
 0x11b   :  { %v142_v6 = vmul.f32 0.125, %v141_v5 }
 0x11d   :  { %v143_v7 = vadd.f32 1e-05, %v142_v6 }
 0x11f   :  { %233 = vrsqrt.f32 %v143_v7 }
 0x129   :  { %v234_v12 = vpop.eup %233 }
 0x12a   :  { %v145_v13 = vmul.f32 %v234_v12, %v121_v10 }
 0x12c   :  { %v150_v14 = vrot.slane %v145_v13, %v149_v11 }
 0x12e   :  { %v152_v16 = vmul.f32 %v150_v14, %v133_v61 }
 0x130   :  { %v159_v17 = vadd.f32 %v165_v15, %v152_v16 }
 0x132   :  { %160 = vst.msk [vmem:[%s378_s4] sm:$0xff] %vm123_vm0, %v159_v17 }

// kernel: netvlad_loupe_forward.3
= control target key start
LH: loop header
LB: loop body
LE: loop exit
PB: predicated region body
PF: predicated region fallthrough
CT: control target
= control target key end

     0   :  { %vm32_vm0 = vcmask 261120   ;;  %vm164_vm1 = vcmask 64512   ;;  %s3166_s1 = inlined_call_operand.vmem [shape: f32[32,8], index: 1, kind: input, shape index: {}]   ;;  %s3167_s0 = inlined_call_operand.vmem [shape: f32[8,8,32], index: 0, kind: input, shape index: {}]   ;;  %s3168_s2 = inlined_call_operand.vmem [shape: f32[1,8], index: 2, kind: input, shape index: {}]   ;;  %s3169_s3 = inlined_call_operand.vmem [shape: f32[1,8], index: 3, kind: input, shape index: {}]   ;;  %s3170_s4 = inlined_call_operand.vmem [shape: f32[1,32,8], index: 4, kind: input, shape index: {}]   ;;  %s3171_s5 = inlined_call_operand.vmem [shape: f32[8,32,8], index: 5, kind: output, shape index: {}]  }
   0x1   :  { %v28_v0 = vld [vmem:[%s3166_s1] sm:$0xff]  ;;  %v29_v1 = vld [vmem:[%s3166_s1 + $0x8] sm:$0xff]  ;;  %v30_v2 = vld [vmem:[%s3166_s1 + $0x10] sm:$0xff] }
   0x2   :  { %v2218_v3 = vpack.c.bf16 %v29_v1, %v28_v0  ;;  %v31_v4 = vld [vmem:[%s3166_s1 + $0x18] sm:$0xff]  ;;  %v20_v5 = vld [vmem:[%s3167_s0] sm:$0xff]  ;;  %v21_v7 = vld [vmem:[%s3167_s0 + $0x8] sm:$0xff] }
   0x3   :  { %v2222_v6 = vpack.c.bf16 %v31_v4, %v30_v2  ;;  %2142 = vmatprep.mubr.msk.f32.mxu0 %vm32_vm0, %v20_v5  ;;  %345 = vxpose.xlu0.b32.start.end [1/1] (short) (narrow) %v20_v5, 32  ;;  %v2379_v8 = vld [vmem:[%s3167_s0 + $0x10] sm:$0xff]  ;;  %v2387_v9 = vld [vmem:[%s3167_s0 + $0x18] sm:$0xff]  ;;  %v2392_v10 = vld [vmem:[%s3167_s0 + $0x20] sm:$0xff] }
   0x4   :  { %2219 = vmatprep.subr.bf16.mxu0 %v2218_v3  ;;  %474 = vxpose.xlu1.b32.start.end [1/1] (short) (narrow) %v21_v7, 32  ;;  %v2401_v11 = vld [vmem:[%s3167_s0 + $0x28] sm:$0xff]  ;;  %v2406_v12 = vld [vmem:[%s3167_s0 + $0x30] sm:$0xff]  ;;  %v2415_v13 = vld [vmem:[%s3167_s0 + $0x38] sm:$0xff] }
   0x5   :  { %2221 = vmatpush3.bf16.msra.mxu0 %v2218_v3 }
   0x6   :  { %2223 = vmatprep.subr.bf16.mxu0 %v2222_v6 }
   0x9   :  { %2225 = vmatpush3.bf16.msra.mxu0 %v2222_v6 }
   0xc   :  { %2143 = vmatmul.mubr.msk.f32.vlgmr.msra.gmra.mrb[0].mxu0 %vm32_vm0, %v21_v7 }
   0xd   :  { %2145 = vmatprep.mubr.msk.f32.mxu0 %vm32_vm0, %v2379_v8 }
  0x10   :  { %2146 = vmatmul.mubr.msk.f32.gmra.mrb[2].mxu0 %vm32_vm0, %v2387_v9 }
  0x11   :  { %2148 = vmatprep.mubr.msk.f32.mxu0 %vm32_vm0, %v2392_v10 }
  0x14   :  { %2149 = vmatmul.mubr.msk.f32.gmra.mrb[4].mxu0 %vm32_vm0, %v2401_v11 }
  0x15   :  { %2151 = vmatprep.mubr.msk.f32.mxu0 %vm32_vm0, %v2406_v12 }
  0x18   :  { %2152 = vmatmul.mubr.msk.f32.gmra.mrb[6].mxu0 %vm32_vm0, %v2415_v13 }
  0xdf   :  { %v2144_v14 = vpop.f32.mrb[0].mxu0 }
  0xe0   :  { %v166_v15 = vsel %vm164_vm1, %v2144_v14, 0.0  ;;  %v123_v16 = vpop.f32.mrb[1].mxu0 }
  0xe1   :  { %v165_v17 = vsel %vm164_vm1, %v123_v16, 0.0 }
  0xe2   :  { %v167_v18 = vadd.f32 %v166_v15, %v165_v17 }
  0xe3   :  { %v2147_v19 = vpop.f32.mrb[2].mxu0 }
  0xe4   :  { %v133_v20 = vpop.f32.mrb[3].mxu0  ;;  %v170_v23 = vsel %vm164_vm1, %v2147_v19, 0.0 }
  0xe5   :  { %v168_v21 = vsel %vm164_vm1, %v133_v20, 0.0 }
  0xe6   :  { %v169_v22 = vadd.f32 %v168_v21, %v167_v18 }
  0xe7   :  { %v2150_v24 = vpop.f32.mrb[4].mxu0 }
  0xe8   :  { %v143_v25 = vpop.f32.mrb[5].mxu0  ;;  %v171_v26 = vadd.f32 %v170_v23, %v169_v22  ;;  %v174_v29 = vsel %vm164_vm1, %v2150_v24, 0.0 }
  0xe9   :  { %v172_v27 = vsel %vm164_vm1, %v143_v25, 0.0 }
  0xea   :  { %v173_v28 = vadd.f32 %v172_v27, %v171_v26  ;;  %v361_v26 = vpop.trf.xlu0 }
  0xeb   :  { %v2153_v30 = vpop.f32.mrb[6].mxu0  ;;  %2156 = vmatprep.mubr.msk.f32.mxu1 %vm164_vm1, %v361_v26 }
  0xec   :  { %v153_v31 = vpop.f32.mrb[7].mxu0  ;;  %v175_v32 = vadd.f32 %v174_v29, %v173_v28  ;;  %v178_v35 = vsel %vm164_vm1, %v2153_v30, 0.0  ;;  %v162_v28 = vld [vmem:[%s3168_s2] sm:$0x1] }
  0xed   :  { %v176_v33 = vsel %vm164_vm1, %v153_v31, 0.0 }
  0xee   :  { %v177_v34 = vadd.f32 %v176_v33, %v175_v32  ;;  %v2049_v33 = vld [vmem:[%s3169_s3] ss:$0 sm:$0xff] }
  0xf0   :  { %v179_v36 = vadd.f32 %v178_v35, %v177_v34 }
  0xf2   :  { %v180_v37 = vrot.slane %v179_v36, 4 }
  0xf4   :  { %v181_v38 = vadd.f32 %v180_v37, %v179_v36 }
  0xf6   :  { %v182_v39 = vrot.slane %v181_v38, 2 }
  0xf8   :  { %v183_v40 = vadd.f32 %v182_v39, %v181_v38 }
  0xfa   :  { %v184_v41 = vrot.slane %v183_v40, 1 }
  0xfc   :  { %v185_v42 = vadd.f32 %v184_v41, %v183_v40 }
  0xfe   :  { %v187_v43 = vmul.f32 0.015625, %v185_v42 }
 0x100   :  { %v188_v44 = vsub.f32 %v123_v16, %v187_v43  ;;  %v189_v45 = vsub.f32 %v2144_v14, %v187_v43  ;;  %v190_v46 = vsub.f32 %v133_v20, %v187_v43  ;;  %v191_v47 = vsub.f32 %v2147_v19, %v187_v43 }
 0x101   :  { %v192_v48 = vsub.f32 %v143_v25, %v187_v43  ;;  %v193_v49 = vsub.f32 %v2150_v24, %v187_v43  ;;  %v194_v50 = vsub.f32 %v153_v31, %v187_v43  ;;  %v195_v51 = vsub.f32 %v2153_v30, %v187_v43 }
 0x102   :  { %v196_v52 = vmul.f32 %v188_v44, %v188_v44  ;;  %v197_v53 = vmul.f32 %v189_v45, %v189_v45  ;;  %v198_v54 = vmul.f32 %v190_v46, %v190_v46  ;;  %v199_v55 = vmul.f32 %v191_v47, %v191_v47 }
 0x103   :  { %v200_v59 = vmul.f32 %v192_v48, %v192_v48  ;;  %v201_v62 = vmul.f32 %v193_v49, %v193_v49  ;;  %v202_v1 = vmul.f32 %v194_v50, %v194_v50  ;;  %v203_v4 = vmul.f32 %v195_v51, %v195_v51 }
 0x104   :  { %v204_v56 = vsel %vm164_vm1, %v196_v52, 0.0  ;;  %v205_v57 = vsel %vm164_vm1, %v197_v53, 0.0  ;;  %v207_v60 = vsel %vm164_vm1, %v198_v54, 0.0  ;;  %v209_v63 = vsel %vm164_vm1, %v199_v55, 0.0 }
 0x105   :  { %v206_v58 = vadd.f32 %v205_v57, %v204_v56  ;;  %v211_v2 = vsel %vm164_vm1, %v200_v59, 0.0  ;;  %v213_v5 = vsel %vm164_vm1, %v201_v62, 0.0  ;;  %v215_v7 = vsel %vm164_vm1, %v202_v1, 0.0 }
 0x106   :  { %v217_v15 = vsel %vm164_vm1, %v203_v4, 0.0  ;;  %v230_v25 = vlaneseq }
 0x107   :  { %v208_v61 = vadd.f32 %v207_v60, %v206_v58  ;;  %v2457_v58 = vpop.trf.xlu1  ;;  %v2461_v60 = vpop.trf.xlu0 }
 0x108   :  { %v231_v27 = vshrl.u32 %v230_v25, 7 }
 0x109   :  { %v210_v0 = vadd.f32 %v209_v63, %v208_v61 }
 0x10a   :  { %v232_v29 = vsub.s32 0, %v231_v27 }
 0x10b   :  { %v212_v3 = vadd.f32 %v211_v2, %v210_v0  ;;  %v2459_v59 = vpop.trf.xlu1 }
 0x10d   :  { %v214_v6 = vadd.f32 %v213_v5, %v212_v3 }
 0x10f   :  { %v216_v14 = vadd.f32 %v215_v7, %v214_v6  ;;  %v2463_v61 = vpop.trf.xlu1 }
 0x111   :  { %v218_v16 = vadd.f32 %v217_v15, %v216_v14 }
 0x113   :  { %v219_v17 = vrot.slane %v218_v16, 4  ;;  %v2467_v62 = vpop.trf.xlu1 }
 0x115   :  { %v220_v18 = vadd.f32 %v219_v17, %v218_v16 }
 0x117   :  { %v221_v19 = vrot.slane %v220_v18, 2 }
 0x119   :  { %v222_v20 = vadd.f32 %v221_v19, %v220_v18 }
 0x11b   :  { %v223_v21 = vrot.slane %v222_v20, 1 }
 0x11d   :  { %v224_v22 = vadd.f32 %v223_v21, %v222_v20 }
 0x11f   :  { %v225_v23 = vmul.f32 0.015625, %v224_v22 }
 0x121   :  { %v226_v24 = vadd.f32 1e-05, %v225_v23 }
 0x123   :  { %2229 = vrsqrt.f32 %v226_v24 }
 0x12d   :  { %v2230_v30 = vpop.eup %2229 }
 0x12e   :  { %v228_v31 = vmul.f32 %v2230_v30, %v162_v28 }
 0x130   :  { %v233_v32 = vrot.slane %v228_v31, %v232_v29 }
 0x132   :  { %v241_v34 = vmul.f32 %v233_v32, %v194_v50  ;;  %v237_v35 = vmul.f32 %v233_v32, %v190_v46  ;;  %v235_v36 = vmul.f32 %v233_v32, %v188_v44  ;;  %v236_v37 = vmul.f32 %v233_v32, %v189_v45 }
 0x133   :  { %v239_v38 = vmul.f32 %v233_v32, %v192_v48  ;;  %v238_v39 = vmul.f32 %v233_v32, %v191_v47  ;;  %v240_v40 = vmul.f32 %v233_v32, %v193_v49  ;;  %v242_v41 = vmul.f32 %v233_v32, %v195_v51 }
 0x134   :  { %v251_v42 = vadd.f32 %v2049_v33, %v237_v35  ;;  %v249_v43 = vadd.f32 %v2049_v33, %v235_v36  ;;  %v250_v57 = vadd.f32 %v2049_v33, %v236_v37  ;;  %v255_v47 = vadd.f32 %v2049_v33, %v241_v34 }
 0x135   :  { %v252_v52 = vadd.f32 %v2049_v33, %v238_v39  ;;  %v2442_v53 = vadd.f32 %v2049_v33, %v240_v40  ;;  %v2444_v54 = vadd.f32 %v2049_v33, %v242_v41  ;;  %v253_v45 = vadd.f32 %v2049_v33, %v239_v38 }
 0x136   :  { %v263_v55 = vsel %vm164_vm1, %v251_v42, -inf  ;;  %v257_v56 = vsel %vm164_vm1, %v249_v43, -inf  ;;  %v260_v44 = vsel %vm164_vm1, %v250_v57, -inf  ;;  %v275_v48 = vsel %vm164_vm1, %v255_v47, -inf }
 0x137   :  { %264 = vmax.xlane.f32.xlu1 %v263_v55  ;;  %258 = vmax.xlane.f32.xlu0 %v257_v56  ;;  %v269_v46 = vsel %vm164_vm1, %v253_v45, -inf  ;;  %v266_v49 = vsel %vm164_vm1, %v252_v52, -inf  ;;  %v272_v50 = vsel %vm164_vm1, %v2442_v53, -inf  ;;  %v278_v51 = vsel %vm164_vm1, %v2444_v54, -inf }
 0x13b   :  { %261 = vmax.xlane.f32.xlu0 %v260_v44 }
 0x13f   :  { %270 = vmax.xlane.f32.xlu0 %v269_v46 }
 0x143   :  { %276 = vmax.xlane.f32.xlu0 %v275_v48 }
 0x16a   :  { %732 = vxpose.xlu1.b32.start.end [1/1] (short) (narrow) %v2387_v9, 32  ;;  %v2465_v9 = vpop.trf.xlu0 }
 0x16e   :  { %v2469_v63 = vpop.trf.xlu0 }
 0x19d   :  { %267 = vmax.xlane.f32.xlu1 %v266_v49 }
 0x1a1   :  { %273 = vmax.xlane.f32.xlu1 %v272_v50 }
 0x1a5   :  { %279 = vmax.xlane.f32.xlu1 %v278_v51 }
 0x1c4   :  { %v265_v0 = vpop.xlane.xlu1 %264  ;;  %v259_v1 = vpop.xlane.xlu0 %258 }
 0x1c5   :  { %v283_v2 = vsub.f32 %v251_v42, %v265_v0  ;;  %v281_v3 = vsub.f32 %v249_v43, %v259_v1 }
 0x1c7   :  { %v289_v4 = vmul.f32 1.442695, %v281_v3  ;;  %v293_v5 = vmul.f32 1.442695, %v283_v2 }
 0x1c8   :  { %v262_v6 = vpop.xlane.xlu0 %261 }
 0x1c9   :  { %v282_v7 = vsub.f32 %v250_v57, %v262_v6  ;;  %2231 = vpow2.f32 %v289_v4 }
 0x1ca   :  { %2233 = vpow2.f32 %v293_v5 }
 0x1cb   :  { %v291_v14 = vmul.f32 1.442695, %v282_v7 }
 0x1cc   :  { %v271_v25 = vpop.xlane.xlu0 %270 }
 0x1cd   :  { %2235 = vpow2.f32 %v291_v14  ;;  %v285_v26 = vsub.f32 %v253_v45, %v271_v25 }
 0x1cf   :  { %v297_v31 = vmul.f32 1.442695, %v285_v26 }
 0x1d0   :  { %v277_v28 = vpop.xlane.xlu0 %276 }
 0x1d1   :  { %v287_v32 = vsub.f32 %v255_v47, %v277_v28 }
 0x1d3   :  { %v2232_v15 = vpop.eup %2231 }
 0x1d4   :  { %v305_v16 = vsel %vm164_vm1, %v2232_v15, 0.0  ;;  %v2234_v17 = vpop.eup %2233 }
 0x1d5   :  { %306 = vadd.xlane.f32.xlu0 %v305_v16  ;;  %v311_v20 = vsel %vm164_vm1, %v2234_v17, 0.0 }
 0x1d7   :  { %v2236_v18 = vpop.eup %2235 }
 0x1d8   :  { %v308_v19 = vsel %vm164_vm1, %v2236_v18, 0.0 }
 0x1d9   :  { %309 = vadd.xlane.f32.xlu1 %v308_v19  ;;  %312 = vadd.xlane.f32.xlu0 %v311_v20 }
 0x1ea   :  { %v748_v21 = vpop.trf.xlu1 }
 0x1eb   :  { %2180 = vmatprep.mubr.msk.f32.mxu0 %vm164_vm1, %v748_v21 }
 0x1ee   :  { %v2476_v22 = vpop.trf.xlu1 }
 0x1f2   :  { %v2478_v23 = vpop.trf.xlu1 }
 0x1f6   :  { %v2480_v24 = vpop.trf.xlu1 }
 0x206   :  { %603 = vxpose.xlu0.b32.start.end [1/1] (short) (narrow) %v2379_v8, 32  ;;  %v301_v8 = vmul.f32 1.442695, %v287_v32 }
 0x22a   :  { %v268_v27 = vpop.xlane.xlu1 %267 }
 0x22b   :  { %v284_v29 = vsub.f32 %v252_v52, %v268_v27 }
 0x22d   :  { %v295_v30 = vmul.f32 1.442695, %v284_v29 }
 0x22e   :  { %v274_v33 = vpop.xlane.xlu1 %273 }
 0x22f   :  { %2237 = vpow2.f32 %v295_v30  ;;  %v286_v34 = vsub.f32 %v2442_v53, %v274_v33 }
 0x230   :  { %2239 = vpow2.f32 %v297_v31 }
 0x231   :  { %v299_v35 = vmul.f32 1.442695, %v286_v34 }
 0x232   :  { %v280_v52 = vpop.xlane.xlu1 %279 }
 0x233   :  { %2241 = vpow2.f32 %v299_v35  ;;  %v288_v49 = vsub.f32 %v2444_v54, %v280_v52 }
 0x234   :  { %2243 = vpow2.f32 %v301_v8 }
 0x235   :  { %v303_v51 = vmul.f32 1.442695, %v288_v49 }
 0x239   :  { %v2483_v36 = vpop.eup %2237 }
 0x23a   :  { %v314_v37 = vsel %vm164_vm1, %v2483_v36, 0.0  ;;  %v2487_v38 = vpop.eup %2239 }
 0x23b   :  { %315 = vadd.xlane.f32.xlu1 %v314_v37  ;;  %v317_v41 = vsel %vm164_vm1, %v2487_v38, 0.0  ;;  %v2590_v37 = vld [vmem:[%s3170_s4 + $0x8] sm:$0xff] }
 0x23d   :  { %v2489_v39 = vpop.eup %2241 }
 0x23e   :  { %v320_v40 = vsel %vm164_vm1, %v2489_v39, 0.0  ;;  %v2495_v42 = vpop.eup %2243 }
 0x23f   :  { %321 = vadd.xlane.f32.xlu1 %v320_v40  ;;  %318 = vadd.xlane.f32.xlu0 %v317_v41  ;;  %v323_v43 = vsel %vm164_vm1, %v2495_v42, 0.0 }
 0x243   :  { %324 = vadd.xlane.f32.xlu0 %v323_v43 }
 0x262   :  { %v307_v53 = vpop.xlane.xlu0 %306 }
 0x263   :  { %2245 = vrcp.f32 %v307_v53  ;;  %v2604_v53 = vld [vmem:[%s3170_s4 + $0x18] sm:$0xff] }
 0x266   :  { %v310_v55 = vpop.xlane.xlu1 %309  ;;  %v313_v56 = vpop.xlane.xlu0 %312 }
 0x267   :  { %2247 = vrcp.f32 %v310_v55 }
 0x268   :  { %2249 = vrcp.f32 %v313_v56 }
 0x269   :  { %2251 = vpow2.f32 %v303_v51 }
 0x26d   :  { %v2246_v57 = vpop.eup %2245 }
 0x26e   :  { %v2499_v44 = vmul.f32 %v2246_v57, %v2232_v15  ;;  %v2611_v57 = vld [vmem:[%s3170_s4 + $0x10] sm:$0xff] }
 0x270   :  { %861 = vxpose.xlu0.b32.start.end [1/1] (short) (narrow) %v2392_v10, 32  ;;  %2154 = vmatprep.subr.mxu1 %v2499_v44 }
 0x271   :  { %v2248_v45 = vpop.eup %2247  ;;  %2155 = vmatpush3.msra.mxu1 %v2499_v44 }
 0x272   :  { %v2250_v46 = vpop.eup %2249  ;;  %990 = vxpose.xlu1.b32.start.end [1/1] (short) (narrow) %v2401_v11, 32  ;;  %v2505_v47 = vmul.f32 %v2248_v45, %v2236_v18  ;;  %2157 = vmatmul.mubr.msk.f32.vlgmr.msra.gmra.mrb[0].mxu1 %vm164_vm1, %v2461_v60 }
 0x273   :  { %2159 = vmatprep.mubr.msk.f32.mxu1 %vm164_vm1, %v2465_v9  ;;  %v2512_v48 = vmul.f32 %v2250_v46, %v2234_v17 }
 0x274   :  { %2162 = vmatprep.subr.mxu1 %v2505_v47  ;;  %v1384_v26 = vsel %vm164_vm1, %v2505_v47, 0.0 }
 0x275   :  { %2163 = vmatpush3.msra.mxu1 %v2505_v47  ;;  %v1385_v29 = vrot.slane %v1384_v26, 4 }
 0x276   :  { %2170 = vmatprep.subr.mxu1 %v2512_v48  ;;  %2160 = vmatmul.mubr.msk.f32.gmra.mrb[2].mxu1 %vm164_vm1, %v2469_v63 }
 0x277   :  { %2164 = vmatprep.mubr.msk.f32.mxu1 %vm164_vm1, %v2457_v58  ;;  %v1386_v31 = vadd.f32 %v1385_v29, %v1384_v26 }
 0x279   :  { %v1387_v33 = vrot.slane %v1386_v31, 2 }
 0x27a   :  { %2165 = vmatmul.mubr.msk.f32.vlgmr.msra.gmra.mrb[4].mxu1 %vm164_vm1, %v2459_v59 }
 0x27b   :  { %2171 = vmatpush3.msra.mxu1 %v2512_v48  ;;  %2167 = vmatprep.mubr.msk.f32.mxu1 %vm164_vm1, %v2463_v61  ;;  %v1388_v8 = vadd.f32 %v1387_v33, %v1386_v31 }
 0x27d   :  { %1119 = vxpose.xlu0.b32.start.end [1/1] (short) (narrow) %v2406_v12, 32  ;;  %v2535_v12 = vpop.eup %2251  ;;  %v1389_v41 = vrot.slane %v1388_v8, 1 }
 0x27e   :  { %2168 = vmatmul.mubr.msk.f32.gmra.mrb[6].mxu1 %vm164_vm1, %v2467_v62  ;;  %v326_v59 = vsel %vm164_vm1, %v2535_v12, 0.0 }
 0x27f   :  { %v1390_v47 = vadd.f32 %v1389_v41, %v1388_v8 }
 0x286   :  { %v619_v10 = vpop.trf.xlu0 }
 0x287   :  { %2172 = vmatprep.mubr.msk.f32.mxu1 %vm164_vm1, %v619_v10 }
 0x28a   :  { %v620_v11 = vpop.trf.xlu0 }
 0x28b   :  { %2173 = vmatmul.mubr.msk.f32.vlgmr.msra.gmra.mrb[8].mxu1 %vm164_vm1, %v620_v11 }
 0x28e   :  { %v621_v50 = vpop.trf.xlu0 }
 0x28f   :  { %2175 = vmatprep.mubr.msk.f32.mxu1 %vm164_vm1, %v621_v50 }
 0x292   :  { %v622_v58 = vpop.trf.xlu0 }
 0x293   :  { %2176 = vmatmul.mubr.msk.f32.gmra.mrb[10].mxu1 %vm164_vm1, %v622_v58 }
 0x294   :  { %2183 = vmatprep.mubr.msk.f32.mxu1 %vm164_vm1, %v2478_v23  ;;  %v1377_v23 = vsel %vm164_vm1, %v2499_v44, 0.0 }
 0x2a5   :  { %327 = vadd.xlane.f32.xlu1 %v326_v59 }
 0x2c8   :  { %v316_v60 = vpop.xlane.xlu1 %315 }
 0x2c9   :  { %2253 = vrcp.f32 %v316_v60 }
 0x2cc   :  { %v322_v54 = vpop.xlane.xlu1 %321  ;;  %v319_v61 = vpop.xlane.xlu0 %318 }
 0x2cd   :  { %2255 = vrcp.f32 %v322_v54  ;;  %v1442_v54 = vmul.f32 %v2590_v37, %v1390_v47 }
 0x2ce   :  { %2257 = vrcp.f32 %v319_v61 }
 0x2d0   :  { %v325_v9 = vpop.xlane.xlu0 %324 }
 0x2d1   :  { %2259 = vrcp.f32 %v325_v9 }
 0x2d3   :  { %v2254_v62 = vpop.eup %2253 }
 0x2d4   :  { %v2540_v63 = vmul.f32 %v2254_v62, %v2483_v36 }
 0x2d6   :  { %2178 = vmatprep.subr.mxu0 %v2540_v63  ;;  %2226 = vmatprep.subr.mxu1 %v2540_v63 }
 0x2d7   :  { %v2256_v0 = vpop.eup %2255  ;;  %2179 = vmatpush3.msra.mxu0 %v2540_v63  ;;  %2227 = vmatpush3.msra.mxu1 %v2540_v63 }
 0x2d8   :  { %v2258_v1 = vpop.eup %2257  ;;  %1248 = vxpose.xlu1.b32.start.end [1/1] (short) (narrow) %v2415_v13, 32  ;;  %2181 = vmatmul.mubr.msk.f32.vlgmr.msra.gmra.mrb[8].mxu0 %vm164_vm1, %v2476_v22  ;;  %v2550_v2 = vmul.f32 %v2256_v0, %v2489_v39  ;;  %v2597_v39 = vld [vmem:[%s3170_s4] sm:$0xff] }
 0x2d9   :  { %2184 = vmatmul.mubr.msk.f32.vlgmr.msra.gmra.mrb[12].mxu1 %vm164_vm1, %v2480_v24  ;;  %v2555_v3 = vmul.f32 %v2258_v1, %v2487_v38  ;;  %v1378_v24 = vrot.slane %v1377_v23, 4  ;;  %v1391_v38 = vsel %vm164_vm1, %v2512_v48, 0.0  ;;  %v1441_v1 = vmul.f32 %v2597_v39, %v1390_v47 }
 0x2da   :  { %2194 = vmatprep.subr.mxu0 %v2550_v2 }
 0x2db   :  { %2186 = vmatprep.subr.mxu1 %v2555_v3  ;;  %2195 = vmatpush3.msra.mxu0 %v2550_v2  ;;  %v2260_v4 = vpop.eup %2259  ;;  %v1379_v25 = vadd.f32 %v1378_v24, %v1377_v23 }
 0x2dc   :  { %2187 = vmatpush3.msra.mxu1 %v2555_v3  ;;  %v2562_v13 = vmul.f32 %v2260_v4, %v2495_v42  ;;  %v1392_v42 = vrot.slane %v1391_v38, 4 }
 0x2dd   :  { %v1380_v28 = vrot.slane %v1379_v25, 2 }
 0x2de   :  { %2202 = vmatprep.subr.mxu1 %v2562_v13  ;;  %v1393_v48 = vadd.f32 %v1392_v42, %v1391_v38 }
 0x2df   :  { %v1381_v30 = vadd.f32 %v1380_v28, %v1379_v25 }
 0x2e0   :  { %v1394_v61 = vrot.slane %v1393_v48, 2 }
 0x2e1   :  { %v1382_v34 = vrot.slane %v1381_v30, 1 }
 0x2e3   :  { %v1383_v36 = vadd.f32 %v1382_v34, %v1381_v30 }
 0x2e5   :  { %v1438_v40 = vmul.f32 %v2590_v37, %v1383_v36  ;;  %v1437_v52 = vmul.f32 %v2597_v39, %v1383_v36  ;;  %v1440_v46 = vmul.f32 %v2604_v53, %v1383_v36  ;;  %v1439_v49 = vmul.f32 %v2611_v57, %v1383_v36 }
 0x2f0   :  { %v877_v5 = vpop.trf.xlu0 }
 0x2f1   :  { %2188 = vmatprep.mubr.msk.f32.mxu1 %vm164_vm1, %v877_v5 }
 0x2f2   :  { %v1006_v6 = vpop.trf.xlu1 }
 0x2f3   :  { %2196 = vmatprep.mubr.msk.f32.mxu0 %vm164_vm1, %v1006_v6 }
 0x2f4   :  { %v878_v7 = vpop.trf.xlu0 }
 0x2f5   :  { %2189 = vmatmul.mubr.msk.f32.vlgmr.msra.gmra.mrb[14].mxu1 %vm164_vm1, %v878_v7 }
 0x2f6   :  { %v1007_v14 = vpop.trf.xlu1  ;;  %2203 = vmatpush3.msra.mxu1 %v2562_v13 }
 0x2f7   :  { %2197 = vmatmul.mubr.msk.f32.vlgmr.msra.gmra.mrb[10].mxu0 %vm164_vm1, %v1007_v14 }
 0x2f8   :  { %v879_v15 = vpop.trf.xlu0 }
 0x2f9   :  { %2191 = vmatprep.mubr.msk.f32.mxu1 %vm164_vm1, %v879_v15 }
 0x2fa   :  { %v1008_v16 = vpop.trf.xlu1 }
 0x2fb   :  { %2199 = vmatprep.mubr.msk.f32.mxu0 %vm164_vm1, %v1008_v16  ;;  %v1444_v16 = vmul.f32 %v2604_v53, %v1390_v47 }
 0x2fc   :  { %v880_v17 = vpop.trf.xlu0 }
 0x2fd   :  { %2192 = vmatmul.mubr.msk.f32.gmra.mrb[16].mxu1 %vm164_vm1, %v880_v17  ;;  %v1395_v17 = vadd.f32 %v1394_v61, %v1393_v48 }
 0x2fe   :  { %v1009_v18 = vpop.trf.xlu1 }
 0x2ff   :  { %2200 = vmatmul.mubr.msk.f32.gmra.mrb[12].mxu0 %vm164_vm1, %v1009_v18 }
 0x300   :  { %v1135_v19 = vpop.trf.xlu0 }
 0x301   :  { %2204 = vmatprep.mubr.msk.f32.mxu1 %vm164_vm1, %v1135_v19 }
 0x304   :  { %v1136_v20 = vpop.trf.xlu0 }
 0x305   :  { %2205 = vmatmul.mubr.msk.f32.vlgmr.msra.gmra.mrb[18].mxu1 %vm164_vm1, %v1136_v20 }
 0x308   :  { %v1137_v21 = vpop.trf.xlu0 }
 0x309   :  { %2207 = vmatprep.mubr.msk.f32.mxu1 %vm164_vm1, %v1137_v21  ;;  %v1443_v21 = vmul.f32 %v2611_v57, %v1390_v47 }
 0x30c   :  { %v1138_v22 = vpop.trf.xlu0 }
 0x30d   :  { %2208 = vmatmul.mubr.msk.f32.gmra.mrb[20].mxu1 %vm164_vm1, %v1138_v22 }
 0x332   :  { %v328_v27 = vpop.xlane.xlu1 %327 }
 0x333   :  { %2261 = vrcp.f32 %v328_v27 }
 0x33d   :  { %v2262_v32 = vpop.eup %2261 }
 0x33e   :  { %v2583_v35 = vmul.f32 %v2262_v32, %v2535_v12  ;;  %v1396_v32 = vrot.slane %v1395_v17, 1 }
 0x340   :  { %2210 = vmatprep.subr.mxu0 %v2583_v35  ;;  %v1397_v41 = vadd.f32 %v1396_v32, %v1395_v17 }
 0x341   :  { %2211 = vmatpush3.msra.mxu0 %v2583_v35 }
 0x345   :  { %v2158_v43 = vpop.f32.mrb[0].mxu1 }
 0x346   :  { %v2606_v55 = vsub.f32 %v2158_v43, %v1438_v40  ;;  %v455_v56 = vpop.f32.mrb[1].mxu1 }
 0x347   :  { %v2613_v44 = vsub.f32 %v455_v56, %v1437_v52 }
 0x348   :  { %v1502_v45 = vmul.f32 %v2606_v55, %v2606_v55 }
 0x349   :  { %v1501_v10 = vmul.f32 %v2613_v44, %v2613_v44  ;;  %v2161_v11 = vpop.f32.mrb[2].mxu1 }
 0x34a   :  { %v1534_v50 = vsel %vm164_vm1, %v1502_v45, 0.0  ;;  %v2622_v51 = vsub.f32 %v2161_v11, %v1440_v46  ;;  %v465_v58 = vpop.f32.mrb[3].mxu1  ;;  %v1446_v46 = vmul.f32 %v2590_v37, %v1397_v41 }
 0x34b   :  { %v1533_v12 = vsel %vm164_vm1, %v1501_v10, 0.0  ;;  %v2625_v59 = vsub.f32 %v465_v58, %v1439_v49 }
 0x34c   :  { %v1535_v60 = vadd.f32 %v1534_v50, %v1533_v12  ;;  %v1504_v9 = vmul.f32 %v2622_v51, %v2622_v51  ;;  %v1445_v50 = vmul.f32 %v2597_v39, %v1397_v41 }
 0x34d   :  { %v1503_v62 = vmul.f32 %v2625_v59, %v2625_v59  ;;  %v2166_v0 = vpop.f32.mrb[4].mxu1 }
 0x34e   :  { %v2633_v4 = vsub.f32 %v2166_v0, %v1442_v54  ;;  %v584_v5 = vpop.f32.mrb[5].mxu1  ;;  %v1538_v18 = vsel %vm164_vm1, %v1504_v9, 0.0 }
 0x34f   :  { %v1536_v6 = vsel %vm164_vm1, %v1503_v62, 0.0  ;;  %v2636_v7 = vsub.f32 %v584_v5, %v1441_v1 }
 0x350   :  { %v1537_v14 = vadd.f32 %v1536_v6, %v1535_v60  ;;  %v1506_v15 = vmul.f32 %v2633_v4, %v2633_v4  ;;  %v1448_v6 = vmul.f32 %v2604_v53, %v1397_v41 }
 0x351   :  { %v1505_v19 = vmul.f32 %v2636_v7, %v2636_v7  ;;  %v2169_v20 = vpop.f32.mrb[6].mxu1 }
 0x352   :  { %v1539_v22 = vadd.f32 %v1538_v18, %v1537_v14  ;;  %v1547_v23 = vsel %vm164_vm1, %v1506_v15, 0.0  ;;  %v2646_v24 = vsub.f32 %v2169_v20, %v1444_v16  ;;  %v594_v25 = vpop.f32.mrb[7].mxu1  ;;  %v1447_v16 = vmul.f32 %v2611_v57, %v1397_v41 }
 0x353   :  { %v1546_v26 = vsel %vm164_vm1, %v1505_v19, 0.0  ;;  %v2649_v27 = vsub.f32 %v594_v25, %v1443_v21 }
 0x354   :  { %v1540_v28 = vrot.slane %v1539_v22, 4  ;;  %v1548_v29 = vadd.f32 %v1547_v23, %v1546_v26  ;;  %v1508_v30 = vmul.f32 %v2646_v24, %v2646_v24 }
 0x355   :  { %v1507_v31 = vmul.f32 %v2649_v27, %v2649_v27 }
 0x356   :  { %v1541_v33 = vadd.f32 %v1540_v28, %v1539_v22  ;;  %v1551_v40 = vsel %vm164_vm1, %v1508_v30, 0.0 }
 0x357   :  { %v1549_v34 = vsel %vm164_vm1, %v1507_v31, 0.0 }
 0x358   :  { %v1264_v8 = vpop.trf.xlu1  ;;  %v1542_v36 = vrot.slane %v1541_v33, 2  ;;  %v1550_v38 = vadd.f32 %v1549_v34, %v1548_v29 }
 0x359   :  { %2212 = vmatprep.mubr.msk.f32.mxu0 %vm164_vm1, %v1264_v8 }
 0x35a   :  { %v1543_v42 = vadd.f32 %v1542_v36, %v1541_v33  ;;  %v1552_v43 = vadd.f32 %v1551_v40, %v1550_v38 }
 0x35c   :  { %v1265_v52 = vpop.trf.xlu1  ;;  %v1544_v56 = vrot.slane %v1543_v42, 1  ;;  %v1553_v45 = vrot.slane %v1552_v43, 4 }
 0x35d   :  { %2213 = vmatmul.mubr.msk.f32.vlgmr.msra.gmra.mrb[14].mxu0 %vm164_vm1, %v1265_v52 }
 0x35e   :  { %v1545_v47 = vadd.f32 %v1544_v56, %v1543_v42  ;;  %v1554_v48 = vadd.f32 %v1553_v45, %v1552_v43  ;;  %v2174_v10 = vpop.f32.mrb[8].mxu1 }
 0x35f   :  { %v2660_v11 = vsub.f32 %v2174_v10, %v1446_v46  ;;  %v713_v49 = vpop.f32.mrb[9].mxu1 }
 0x360   :  { %v1266_v58 = vpop.trf.xlu1  ;;  %2263 = vrsqrt.f32 %v1545_v47  ;;  %v1555_v12 = vrot.slane %v1554_v48, 2  ;;  %v2666_v54 = vsub.f32 %v713_v49, %v1445_v50  ;;  %vm1639_vm2 = vcmp.eq.f32.partialorder %v1545_v47, inf }
 0x361   :  { %2215 = vmatprep.mubr.msk.f32.mxu0 %vm164_vm1, %v1266_v58  ;;  %v1510_v60 = vmul.f32 %v2660_v11, %v2660_v11  ;;  %v1642_v26 = vand.u32 2147483648, %v1545_v47  ;;  %vm1641_vm3 = vcmp.eq.f32.partialorder %v1545_v47, 0.0 }
 0x362   :  { %v1556_v61 = vadd.f32 %v1555_v12, %v1554_v48  ;;  %v1509_v62 = vmul.f32 %v2666_v54, %v2666_v54 }
 0x363   :  { %v1560_v9 = vsel %vm164_vm1, %v1510_v60, 0.0 }
 0x364   :  { %v1267_v0 = vpop.trf.xlu1  ;;  %v1557_v1 = vrot.slane %v1556_v61, 1  ;;  %v1559_v5 = vsel %vm164_vm1, %v1509_v62, 0.0 }
 0x365   :  { %2216 = vmatmul.mubr.msk.f32.gmra.mrb[16].mxu0 %vm164_vm1, %v1267_v0  ;;  %v1561_v14 = vadd.f32 %v1560_v9, %v1559_v5 }
 0x366   :  { %v2177_v15 = vpop.f32.mrb[10].mxu1  ;;  %v1558_v17 = vadd.f32 %v1557_v1, %v1556_v61 }
 0x367   :  { %v2675_v18 = vsub.f32 %v2177_v15, %v1448_v6  ;;  %v723_v19 = vpop.f32.mrb[11].mxu1 }
 0x368   :  { %v2677_v20 = vsub.f32 %v723_v19, %v1447_v16  ;;  %2265 = vrsqrt.f32 %v1558_v17  ;;  %vm1646_vm4 = vcmp.eq.f32.partialorder %v1558_v17, inf  ;;  %v1649_v41 = vand.u32 2147483648, %v1558_v17 }
 0x369   :  { %v1512_v22 = vmul.f32 %v2675_v18, %v2675_v18  ;;  %vm1648_vm5 = vcmp.eq.f32.partialorder %v1558_v17, 0.0 }
 0x36a   :  { %v2264_v21 = vpop.eup %2263  ;;  %v1511_v23 = vmul.f32 %v2677_v20, %v2677_v20 }
 0x36b   :  { %v1638_v25 = vmul.f32 %v2264_v21, %v1545_v47  ;;  %v1564_v32 = vsel %vm164_vm1, %v1512_v22, 0.0 }
 0x36c   :  { %v1562_v28 = vsel %vm164_vm1, %v1511_v23, 0.0 }
 0x36d   :  { %v1640_v29 = vsel %vm1639_vm2, %v1545_v47, %v1638_v25  ;;  %v1563_v30 = vadd.f32 %v1562_v28, %v1561_v14 }
 0x36e   :  { %v1643_v31 = vsel %vm1641_vm3, %v1642_v26, %v1640_v29 }
 0x36f   :  { %v1693_v33 = vmax.f32 %v1643_v31, 1e-12  ;;  %v1565_v34 = vadd.f32 %v1564_v32, %v1563_v30 }
 0x371   :  { %2267 = vrcp.f32 %v1693_v33  ;;  %v1566_v8 = vrot.slane %v1565_v34, 4 }
 0x372   :  { %v2266_v36 = vpop.eup %2265 }
 0x373   :  { %v1567_v38 = vadd.f32 %v1566_v8, %v1565_v34  ;;  %v1645_v40 = vmul.f32 %v2266_v36, %v1558_v17 }
 0x375   :  { %v1568_v42 = vrot.slane %v1567_v38, 2  ;;  %v1647_v43 = vsel %vm1646_vm4, %v1558_v17, %v1645_v40 }
 0x376   :  { %v1650_v52 = vsel %vm1648_vm5, %v1649_v41, %v1647_v43 }
 0x377   :  { %v1569_v56 = vadd.f32 %v1568_v42, %v1567_v38  ;;  %v1694_v45 = vmax.f32 %v1650_v52, 1e-12 }
 0x379   :  { %v1570_v46 = vrot.slane %v1569_v56, 1  ;;  %2269 = vrcp.f32 %v1694_v45 }
 0x37b   :  { %v2268_v47 = vpop.eup %2267  ;;  %v1571_v48 = vadd.f32 %v1570_v46, %v1569_v56 }
 0x37c   :  { %v2686_v10 = vmul.f32 %v2268_v47, %v2613_v44  ;;  %v2689_v49 = vmul.f32 %v2268_v47, %v2606_v55  ;;  %v2692_v50 = vmul.f32 %v2268_v47, %v2625_v59  ;;  %v2695_v58 = vmul.f32 %v2268_v47, %v2622_v51 }
 0x37d   :  { %2271 = vrsqrt.f32 %v1571_v48  ;;  %vm1653_vm6 = vcmp.eq.f32.partialorder %v1571_v48, inf  ;;  %v1656_v22 = vand.u32 2147483648, %v1571_v48  ;;  %vm1655_vm7 = vcmp.eq.f32.partialorder %v1571_v48, 0.0 }
 0x37e   :  { %v1741_v12 = vmul.f32 %v2686_v10, %v2686_v10  ;;  %v1742_v60 = vmul.f32 %v2689_v49, %v2689_v49  ;;  %v1743_v44 = vmul.f32 %v2692_v50, %v2692_v50  ;;  %v1744_v59 = vmul.f32 %v2695_v58, %v2695_v58 }
 0x380   :  { %v1773_v61 = vsel %vm164_vm1, %v1741_v12, 0.0  ;;  %v1774_v55 = vsel %vm164_vm1, %v1742_v60, 0.0  ;;  %v1776_v51 = vsel %vm164_vm1, %v1743_v44, 0.0  ;;  %v1778_v1 = vsel %vm164_vm1, %v1744_v59, 0.0 }
 0x381   :  { %v1775_v9 = vadd.f32 %v1774_v55, %v1773_v61 }
 0x383   :  { %v1777_v62 = vadd.f32 %v1776_v51, %v1775_v9  ;;  %v2270_v0 = vpop.eup %2269 }
 0x384   :  { %v2710_v5 = vmul.f32 %v2270_v0, %v2636_v7  ;;  %v2713_v6 = vmul.f32 %v2270_v0, %v2633_v4  ;;  %v2716_v14 = vmul.f32 %v2270_v0, %v2649_v27  ;;  %v2719_v16 = vmul.f32 %v2270_v0, %v2646_v24 }
 0x385   :  { %v1779_v15 = vadd.f32 %v1778_v1, %v1777_v62  ;;  %v1398_v27 = vsel %vm164_vm1, %v2540_v63, 0.0 }
 0x386   :  { %v1399_v30 = vrot.slane %v1398_v27, 4 }
 0x387   :  { %v2272_v17 = vpop.eup %2271  ;;  %v1780_v19 = vrot.slane %v1779_v15, 4 }
 0x388   :  { %v1652_v21 = vmul.f32 %v2272_v17, %v1571_v48  ;;  %v1400_v32 = vadd.f32 %v1399_v30, %v1398_v27  ;;  %v1405_v17 = vsel %vm164_vm1, %v2555_v3, 0.0 }
 0x389   :  { %v1781_v23 = vadd.f32 %v1780_v19, %v1779_v15  ;;  %v1406_v27 = vrot.slane %v1405_v17, 4 }
 0x38a   :  { %v1654_v25 = vsel %vm1653_vm6, %v1571_v48, %v1652_v21  ;;  %v1401_v34 = vrot.slane %v1400_v32, 2 }
 0x38b   :  { %v1657_v7 = vsel %vm1655_vm7, %v1656_v22, %v1654_v25  ;;  %v1782_v26 = vrot.slane %v1781_v23, 2  ;;  %v1412_v25 = vsel %vm164_vm1, %v2550_v2, 0.0 }
 0x38c   :  { %v1695_v28 = vmax.f32 %v1657_v7, 1e-12  ;;  %v1402_v43 = vadd.f32 %v1401_v34, %v1400_v32  ;;  %v1413_v30 = vrot.slane %v1412_v25, 4  ;;  %v1407_v34 = vadd.f32 %v1406_v27, %v1405_v17 }
 0x38d   :  { %v1783_v4 = vadd.f32 %v1782_v26, %v1781_v23 }
 0x38e   :  { %2273 = vrcp.f32 %v1695_v28  ;;  %v1403_v45 = vrot.slane %v1402_v43, 1 }
 0x38f   :  { %v1784_v29 = vrot.slane %v1783_v4, 1 }
 0x390   :  { %v1404_v12 = vadd.f32 %v1403_v45, %v1402_v43 }
 0x391   :  { %v1785_v24 = vadd.f32 %v1784_v29, %v1783_v4 }
 0x392   :  { %v1450_v61 = vmul.f32 %v2590_v37, %v1404_v12  ;;  %v1452_v59 = vmul.f32 %v2604_v53, %v1404_v12  ;;  %v1449_v9 = vmul.f32 %v2597_v39, %v1404_v12  ;;  %v1451_v15 = vmul.f32 %v2611_v57, %v1404_v12 }
 0x393   :  { %v1877_v31 = vsel %vm164_vm1, %v1785_v24, 0.0 }
 0x394   :  { %1878 = vadd.xlane.f32.xlu0 %v1877_v31 }
 0x398   :  { %v2274_v33 = vpop.eup %2273 }
 0x399   :  { %v2725_v8 = vmul.f32 %v2274_v33, %v2666_v54  ;;  %v2728_v36 = vmul.f32 %v2274_v33, %v2660_v11  ;;  %v2731_v38 = vmul.f32 %v2274_v33, %v2677_v20  ;;  %v2734_v63 = vmul.f32 %v2274_v33, %v2675_v18 }
 0x39b   :  { %v1749_v40 = vmul.f32 %v2725_v8, %v2725_v8  ;;  %v1750_v41 = vmul.f32 %v2728_v36, %v2728_v36  ;;  %v1751_v42 = vmul.f32 %v2731_v38, %v2731_v38  ;;  %v1752_v20 = vmul.f32 %v2734_v63, %v2734_v63 }
 0x39d   :  { %v1799_v54 = vsel %vm164_vm1, %v1749_v40, 0.0  ;;  %v1800_v11 = vsel %vm164_vm1, %v1750_v41, 0.0  ;;  %v1802_v18 = vsel %vm164_vm1, %v1751_v42, 0.0  ;;  %v1804_v46 = vsel %vm164_vm1, %v1752_v20, 0.0 }
 0x39e   :  { %v1801_v52 = vadd.f32 %v1800_v11, %v1799_v54  ;;  %v1414_v41 = vadd.f32 %v1413_v30, %v1412_v25  ;;  %v1408_v11 = vrot.slane %v1407_v34, 2 }
 0x3a0   :  { %v1803_v56 = vadd.f32 %v1802_v18, %v1801_v52  ;;  %v1415_v20 = vrot.slane %v1414_v41, 2  ;;  %v1409_v18 = vadd.f32 %v1408_v11, %v1407_v34 }
 0x3a2   :  { %v1805_v47 = vadd.f32 %v1804_v46, %v1803_v56  ;;  %v1419_v56 = vsel %vm164_vm1, %v2562_v13, 0.0  ;;  %v1416_v46 = vadd.f32 %v1415_v20, %v1414_v41 }
 0x3a4   :  { %v1806_v48 = vrot.slane %v1805_v47, 4 }
 0x3a6   :  { %v1807_v60 = vadd.f32 %v1806_v48, %v1805_v47  ;;  %v1420_v48 = vrot.slane %v1419_v56, 4 }
 0x3a8   :  { %v1808_v44 = vrot.slane %v1807_v60, 2 }
 0x3aa   :  { %v1809_v51 = vadd.f32 %v1808_v44, %v1807_v60  ;;  %v1410_v60 = vrot.slane %v1409_v18, 1  ;;  %v1417_v44 = vrot.slane %v1416_v46, 1 }
 0x3ab   :  { %v2182_v55 = vpop.f32.mrb[8].mxu0 }
 0x3ac   :  { %v2751_v62 = vsub.f32 %v2182_v55, %v1450_v61  ;;  %v2185_v0 = vpop.f32.mrb[12].mxu1  ;;  %v842_v1 = vpop.f32.mrb[9].mxu0  ;;  %v1810_v23 = vrot.slane %v1809_v51, 1  ;;  %v1421_v55 = vadd.f32 %v1420_v48, %v1419_v56 }
 0x3ad   :  { %v2756_v19 = vsub.f32 %v2185_v0, %v1452_v59  ;;  %v2758_v21 = vsub.f32 %v842_v1, %v1449_v9  ;;  %v852_v22 = vpop.f32.mrb[13].mxu1  ;;  %v1411_v59 = vadd.f32 %v1410_v60, %v1409_v18  ;;  %v1418_v9 = vadd.f32 %v1417_v44, %v1416_v46 }
 0x3ae   :  { %v1514_v7 = vmul.f32 %v2751_v62, %v2751_v62  ;;  %v2764_v26 = vsub.f32 %v852_v22, %v1451_v15  ;;  %v1811_v4 = vadd.f32 %v1810_v23, %v1809_v51  ;;  %v1422_v51 = vrot.slane %v1421_v55, 2 }
 0x3af   :  { %v1513_v28 = vmul.f32 %v2758_v21, %v2758_v21  ;;  %v1516_v24 = vmul.f32 %v2756_v19, %v2756_v19  ;;  %v1454_v0 = vmul.f32 %v2590_v37, %v1411_v59  ;;  %v1453_v15 = vmul.f32 %v2597_v39, %v1411_v59 }
 0x3b0   :  { %v1573_v3 = vsel %vm164_vm1, %v1514_v7, 0.0  ;;  %v1515_v29 = vmul.f32 %v2764_v26, %v2764_v26  ;;  %v1883_v31 = vsel %vm164_vm1, %v1811_v4, 0.0  ;;  %v1458_v13 = vmul.f32 %v2590_v37, %v1418_v9 }
 0x3b1   :  { %v1572_v2 = vsel %vm164_vm1, %v1513_v28, 0.0  ;;  %1884 = vadd.xlane.f32.xlu0 %v1883_v31  ;;  %v1577_v42 = vsel %vm164_vm1, %v1516_v24, 0.0  ;;  %v1457_v25 = vmul.f32 %v2597_v39, %v1418_v9  ;;  %v1423_v7 = vadd.f32 %v1422_v51, %v1421_v55 }
 0x3b2   :  { %v1574_v32 = vadd.f32 %v1573_v3, %v1572_v2  ;;  %v1575_v33 = vsel %vm164_vm1, %v1515_v29, 0.0  ;;  %v1455_v34 = vmul.f32 %v2611_v57, %v1411_v59  ;;  %v1459_v60 = vmul.f32 %v2611_v57, %v1418_v9 }
 0x3b4   :  { %v1576_v40 = vadd.f32 %v1575_v33, %v1574_v32  ;;  %v1456_v33 = vmul.f32 %v2604_v53, %v1411_v59 }
 0x3b6   :  { %v1578_v54 = vadd.f32 %v1577_v42, %v1576_v40 }
 0x3b8   :  { %v1579_v43 = vrot.slane %v1578_v54, 4 }
 0x3ba   :  { %v1580_v52 = vadd.f32 %v1579_v43, %v1578_v54  ;;  %v1424_v54 = vrot.slane %v1423_v7, 1 }
 0x3bc   :  { %v1581_v45 = vrot.slane %v1580_v52, 2 }
 0x3be   :  { %v1582_v47 = vadd.f32 %v1581_v45, %v1580_v52  ;;  %v1460_v45 = vmul.f32 %v2604_v53, %v1418_v9 }
 0x3c0   :  { %v1583_v12 = vrot.slane %v1582_v47, 1 }
 0x3c2   :  { %v1584_v61 = vadd.f32 %v1583_v12, %v1582_v47 }
 0x3c4   :  { %2275 = vrsqrt.f32 %v1584_v61  ;;  %vm1660_vm8 = vcmp.eq.f32.partialorder %v1584_v61, inf  ;;  %v1663_v11 = vand.u32 2147483648, %v1584_v61  ;;  %vm1662_vm9 = vcmp.eq.f32.partialorder %v1584_v61, 0.0 }
 0x3c8   :  { %v2190_v1 = vpop.f32.mrb[14].mxu1 }
 0x3c9   :  { %v2782_v17 = vsub.f32 %v2190_v1, %v1454_v0  ;;  %v971_v22 = vpop.f32.mrb[15].mxu1 }
 0x3ca   :  { %v2198_v23 = vpop.f32.mrb[10].mxu0  ;;  %v2785_v28 = vsub.f32 %v971_v22, %v1453_v15 }
 0x3cb   :  { %v2787_v4 = vsub.f32 %v2198_v23, %v1458_v13  ;;  %v1100_v27 = vpop.f32.mrb[11].mxu0  ;;  %v1518_v3 = vmul.f32 %v2782_v17, %v2782_v17 }
 0x3cc   :  { %v2791_v29 = vsub.f32 %v1100_v27, %v1457_v25  ;;  %v1517_v30 = vmul.f32 %v2785_v28, %v2785_v28 }
 0x3cd   :  { %v1522_v24 = vmul.f32 %v2787_v4, %v2787_v4  ;;  %v1586_v31 = vsel %vm164_vm1, %v1518_v3, 0.0 }
 0x3ce   :  { %v2276_v2 = vpop.eup %2275  ;;  %v1521_v32 = vmul.f32 %v2791_v29, %v2791_v29  ;;  %v1585_v41 = vsel %vm164_vm1, %v1517_v30, 0.0 }
 0x3cf   :  { %v1659_v40 = vmul.f32 %v2276_v2, %v1584_v61  ;;  %v1599_v42 = vsel %vm164_vm1, %v1522_v24, 0.0  ;;  %v1587_v43 = vadd.f32 %v1586_v31, %v1585_v41 }
 0x3d0   :  { %v1598_v20 = vsel %vm164_vm1, %v1521_v32, 0.0  ;;  %v2193_v56 = vpop.f32.mrb[16].mxu1 }
 0x3d1   :  { %v1661_v52 = vsel %vm1660_vm8, %v1584_v61, %v1659_v40  ;;  %v1600_v18 = vadd.f32 %v1599_v42, %v1598_v20  ;;  %v2806_v47 = vsub.f32 %v2193_v56, %v1456_v33  ;;  %v981_v48 = vpop.f32.mrb[17].mxu1  ;;  %v1425_v61 = vadd.f32 %v1424_v54, %v1423_v7 }
 0x3d2   :  { %v1664_v46 = vsel %vm1662_vm9, %v1663_v11, %v1661_v52  ;;  %v2201_v12 = vpop.f32.mrb[12].mxu0  ;;  %v2809_v55 = vsub.f32 %v981_v48, %v1455_v34 }
 0x3d3   :  { %v1696_v44 = vmax.f32 %v1664_v46, 1e-12  ;;  %v2811_v59 = vsub.f32 %v2201_v12, %v1460_v45  ;;  %v1110_v51 = vpop.f32.mrb[13].mxu0  ;;  %v1520_v1 = vmul.f32 %v2806_v47, %v2806_v47  ;;  %v1462_v7 = vmul.f32 %v2590_v37, %v1425_v61 }
 0x3d4   :  { %v2813_v0 = vsub.f32 %v1110_v51, %v1459_v60  ;;  %v1519_v15 = vmul.f32 %v2809_v55, %v2809_v55  ;;  %v1461_v24 = vmul.f32 %v2597_v39, %v1425_v61  ;;  %v1464_v45 = vmul.f32 %v2604_v53, %v1425_v61 }
 0x3d5   :  { %2277 = vrcp.f32 %v1696_v44  ;;  %v1524_v13 = vmul.f32 %v2811_v59, %v2811_v59  ;;  %v1590_v27 = vsel %vm164_vm1, %v1520_v1, 0.0 }
 0x3d6   :  { %v1523_v9 = vmul.f32 %v2813_v0, %v2813_v0  ;;  %v1588_v22 = vsel %vm164_vm1, %v1519_v15, 0.0  ;;  %v1463_v15 = vmul.f32 %v2611_v57, %v1425_v61 }
 0x3d7   :  { %v1589_v23 = vadd.f32 %v1588_v22, %v1587_v43  ;;  %v1603_v31 = vsel %vm164_vm1, %v1524_v13, 0.0 }
 0x3d8   :  { %v1601_v25 = vsel %vm164_vm1, %v1523_v9, 0.0  ;;  %v2206_v30 = vpop.f32.mrb[18].mxu1 }
 0x3d9   :  { %v1602_v3 = vadd.f32 %v1601_v25, %v1600_v18  ;;  %v1591_v2 = vadd.f32 %v1590_v27, %v1589_v23  ;;  %v2829_v32 = vsub.f32 %v2206_v30, %v1462_v7  ;;  %v1229_v33 = vpop.f32.mrb[19].mxu1 }
 0x3da   :  { %v2831_v40 = vsub.f32 %v1229_v33, %v1461_v24 }
 0x3db   :  { %v1604_v34 = vadd.f32 %v1603_v31, %v1602_v3  ;;  %v1592_v41 = vrot.slane %v1591_v2, 4  ;;  %v1526_v42 = vmul.f32 %v2829_v32, %v2829_v32  ;;  %v1746_v31 = vmul.f32 %v2713_v6, %v2713_v6 }
 0x3dc   :  { %v1525_v11 = vmul.f32 %v2831_v40, %v2831_v40 }
 0x3dd   :  { %v1605_v54 = vrot.slane %v1604_v34, 4  ;;  %v1593_v43 = vadd.f32 %v1592_v41, %v1591_v2  ;;  %v1612_v20 = vsel %vm164_vm1, %v1526_v42, 0.0  ;;  %v1745_v2 = vmul.f32 %v2710_v5, %v2710_v5 }
 0x3de   :  { %v1611_v56 = vsel %vm164_vm1, %v1525_v11, 0.0 }
 0x3df   :  { %v2278_v52 = vpop.eup %2277  ;;  %v1606_v18 = vadd.f32 %v1605_v54, %v1604_v34  ;;  %v1594_v60 = vrot.slane %v1593_v43, 2  ;;  %v1613_v51 = vadd.f32 %v1612_v20, %v1611_v56  ;;  %v1747_v34 = vmul.f32 %v2716_v14, %v2716_v14 }
 0x3e0   :  { %v2841_v46 = vmul.f32 %v2278_v52, %v2758_v21  ;;  %v2844_v48 = vmul.f32 %v2278_v52, %v2751_v62  ;;  %v2847_v12 = vmul.f32 %v2278_v52, %v2764_v26  ;;  %v2209_v1 = vpop.f32.mrb[20].mxu1  ;;  %v2851_v13 = vmul.f32 %v2278_v52, %v2756_v19 }
 0x3e1   :  { %v1607_v44 = vrot.slane %v1606_v18, 2  ;;  %v1595_v9 = vadd.f32 %v1594_v60, %v1593_v43  ;;  %v1239_v22 = vpop.f32.mrb[21].mxu1  ;;  %v2853_v21 = vsub.f32 %v2209_v1, %v1464_v45  ;;  %v1786_v42 = vsel %vm164_vm1, %v1745_v2, 0.0 }
 0x3e2   :  { %v2855_v25 = vsub.f32 %v1239_v22, %v1463_v15  ;;  %v1787_v54 = vsel %vm164_vm1, %v1746_v31, 0.0  ;;  %v1789_v20 = vsel %vm164_vm1, %v1747_v34, 0.0  ;;  %v1753_v60 = vmul.f32 %v2841_v46, %v2841_v46 }
 0x3e3   :  { %v1608_v23 = vadd.f32 %v1607_v44, %v1606_v18  ;;  %v1596_v62 = vrot.slane %v1595_v9, 1  ;;  %v1528_v61 = vmul.f32 %v2853_v21, %v2853_v21  ;;  %v1748_v18 = vmul.f32 %v2719_v16, %v2719_v16 }
 0x3e4   :  { %v1527_v26 = vmul.f32 %v2855_v25, %v2855_v25  ;;  %v1788_v45 = vadd.f32 %v1787_v54, %v1786_v42  ;;  %v1754_v44 = vmul.f32 %v2844_v48, %v2844_v48  ;;  %v1755_v34 = vmul.f32 %v2847_v12, %v2847_v12 }
 0x3e5   :  { %v1609_v7 = vrot.slane %v1608_v23, 1  ;;  %v1597_v27 = vadd.f32 %v1596_v62, %v1595_v9  ;;  %v1616_v24 = vsel %vm164_vm1, %v1528_v61, 0.0  ;;  %v1756_v54 = vmul.f32 %v2851_v13, %v2851_v13 }
 0x3e6   :  { %v1614_v19 = vsel %vm164_vm1, %v1527_v26, 0.0  ;;  %v1790_v61 = vadd.f32 %v1789_v20, %v1788_v45  ;;  %v1813_v2 = vsel %vm164_vm1, %v1754_v44, 0.0  ;;  %v1815_v42 = vsel %vm164_vm1, %v1755_v34, 0.0 }
 0x3e7   :  { %v1610_v3 = vadd.f32 %v1609_v7, %v1608_v23  ;;  %2279 = vrsqrt.f32 %v1597_v27  ;;  %v1615_v30 = vadd.f32 %v1614_v19, %v1613_v51  ;;  %vm1667_vm10 = vcmp.eq.f32.partialorder %v1597_v27, inf }
 0x3e8   :  { %v1670_v1 = vand.u32 2147483648, %v1597_v27  ;;  %vm1669_vm11 = vcmp.eq.f32.partialorder %v1597_v27, 0.0  ;;  %v1817_v20 = vsel %vm164_vm1, %v1756_v54, 0.0 }
 0x3e9   :  { %2281 = vrsqrt.f32 %v1610_v3  ;;  %v1617_v33 = vadd.f32 %v1616_v24, %v1615_v30  ;;  %vm1674_vm12 = vcmp.eq.f32.partialorder %v1610_v3, inf  ;;  %v1677_v23 = vand.u32 2147483648, %v1610_v3 }
 0x3ea   :  { %vm1676_vm13 = vcmp.eq.f32.partialorder %v1610_v3, 0.0  ;;  %v1812_v24 = vsel %vm164_vm1, %v1753_v60, 0.0 }
 0x3eb   :  { %v1618_v41 = vrot.slane %v1617_v33, 4 }
 0x3ed   :  { %v1619_v11 = vadd.f32 %v1618_v41, %v1617_v33  ;;  %v1814_v41 = vadd.f32 %v1813_v2, %v1812_v24 }
 0x3ef   :  { %v1620_v52 = vrot.slane %v1619_v11, 2 }
 0x3f1   :  { %v2280_v43 = vpop.eup %2279  ;;  %v1621_v9 = vadd.f32 %v1620_v52, %v1619_v11  ;;  %v1816_v11 = vadd.f32 %v1815_v42, %v1814_v41 }
 0x3f2   :  { %v1666_v51 = vmul.f32 %v2280_v43, %v1597_v27 }
 0x3f3   :  { %v2282_v56 = vpop.eup %2281  ;;  %v1622_v26 = vrot.slane %v1621_v9, 1  ;;  %v1818_v45 = vadd.f32 %v1817_v20, %v1816_v11 }
 0x3f4   :  { %v1673_v15 = vmul.f32 %v2282_v56, %v1610_v3  ;;  %v1668_v22 = vsel %vm1667_vm10, %v1597_v27, %v1666_v51  ;;  %v1791_v27 = vsel %vm164_vm1, %v1748_v18, 0.0 }
 0x3f5   :  { %v1671_v62 = vsel %vm1669_vm11, %v1670_v1, %v1668_v22  ;;  %v1623_v33 = vadd.f32 %v1622_v26, %v1621_v9  ;;  %v1819_v11 = vrot.slane %v1818_v45, 4 }
 0x3f6   :  { %v1675_v7 = vsel %vm1674_vm12, %v1610_v3, %v1673_v15  ;;  %v1697_v19 = vmax.f32 %v1671_v62, 1e-12  ;;  %v1792_v3 = vadd.f32 %v1791_v27, %v1790_v61 }
 0x3f7   :  { %v1678_v30 = vsel %vm1676_vm13, %v1677_v23, %v1675_v7  ;;  %vm1681_vm14 = vcmp.eq.f32.partialorder %v1623_v33, inf  ;;  %v1684_v62 = vand.u32 2147483648, %v1623_v33  ;;  %vm1683_vm15 = vcmp.eq.f32.partialorder %v1623_v33, 0.0 }
 0x3f8   :  { %v1698_v31 = vmax.f32 %v1678_v30, 1e-12  ;;  %2283 = vrcp.f32 %v1697_v19  ;;  %v1793_v43 = vrot.slane %v1792_v3, 4 }
 0x3fa   :  { %2285 = vrcp.f32 %v1698_v31  ;;  %v1794_v56 = vadd.f32 %v1793_v43, %v1792_v3 }
 0x3fb   :  { %2287 = vrsqrt.f32 %v1623_v33 }
 0x402   :  { %v2284_v52 = vpop.eup %2283 }
 0x403   :  { %v2888_v44 = vmul.f32 %v2284_v52, %v2785_v28  ;;  %v2891_v18 = vmul.f32 %v2284_v52, %v2782_v17  ;;  %v2894_v51 = vmul.f32 %v2284_v52, %v2809_v55  ;;  %v2897_v1 = vmul.f32 %v2284_v52, %v2806_v47 }
 0x404   :  { %v2286_v60 = vpop.eup %2285 }
 0x405   :  { %v2288_v15 = vpop.eup %2287  ;;  %v2900_v9 = vmul.f32 %v2286_v60, %v2791_v29  ;;  %v2903_v22 = vmul.f32 %v2286_v60, %v2787_v4  ;;  %v2906_v23 = vmul.f32 %v2286_v60, %v2813_v0  ;;  %v2909_v28 = vmul.f32 %v2286_v60, %v2811_v59 }
 0x406   :  { %v1757_v17 = vmul.f32 %v2888_v44, %v2888_v44  ;;  %v1758_v47 = vmul.f32 %v2891_v18, %v2891_v18  ;;  %v1759_v55 = vmul.f32 %v2894_v51, %v2894_v51  ;;  %v1680_v29 = vmul.f32 %v2288_v15, %v1623_v33 }
 0x407   :  { %v1761_v4 = vmul.f32 %v2900_v9, %v2900_v9  ;;  %v1762_v0 = vmul.f32 %v2903_v22, %v2903_v22  ;;  %v1763_v59 = vmul.f32 %v2906_v23, %v2906_v23  ;;  %v1760_v19 = vmul.f32 %v2897_v1, %v2897_v1 }
 0x408   :  { %v1825_v7 = vsel %vm164_vm1, %v1757_v17, 0.0  ;;  %v1826_v26 = vsel %vm164_vm1, %v1758_v47, 0.0  ;;  %v1682_v61 = vsel %vm1681_vm14, %v1623_v33, %v1680_v29  ;;  %v1828_v31 = vsel %vm164_vm1, %v1759_v55, 0.0 }
 0x409   :  { %v1827_v30 = vadd.f32 %v1826_v26, %v1825_v7  ;;  %v1838_v24 = vsel %vm164_vm1, %v1761_v4, 0.0  ;;  %v1839_v2 = vsel %vm164_vm1, %v1762_v0, 0.0  ;;  %v1685_v27 = vsel %vm1683_vm15, %v1684_v62, %v1682_v61 }
 0x40a   :  { %v1840_v34 = vadd.f32 %v1839_v2, %v1838_v24  ;;  %v1764_v41 = vmul.f32 %v2909_v28, %v2909_v28  ;;  %v1841_v42 = vsel %vm164_vm1, %v1763_v59, 0.0  ;;  %v1699_v54 = vmax.f32 %v1685_v27, 1e-12 }
 0x40b   :  { %v1829_v3 = vadd.f32 %v1828_v31, %v1827_v30  ;;  %v1830_v20 = vsel %vm164_vm1, %v1760_v19, 0.0  ;;  %v1795_v17 = vrot.slane %v1794_v56, 2  ;;  %v1820_v47 = vadd.f32 %v1819_v11, %v1818_v45 }
 0x40c   :  { %v1842_v43 = vadd.f32 %v1841_v42, %v1840_v34  ;;  %2289 = vrcp.f32 %v1699_v54  ;;  %v1843_v60 = vsel %vm164_vm1, %v1764_v41, 0.0  ;;  %v1426_v59 = vsel %vm164_vm1, %v2583_v35, 0.0 }
 0x40d   :  { %v1831_v52 = vadd.f32 %v1830_v20, %v1829_v3  ;;  %v1796_v62 = vadd.f32 %v1795_v17, %v1794_v56  ;;  %v1821_v7 = vrot.slane %v1820_v47, 2  ;;  %v1427_v24 = vrot.slane %v1426_v59, 4 }
 0x40e   :  { %v1844_v33 = vadd.f32 %v1843_v60, %v1842_v43 }
 0x40f   :  { %v1832_v15 = vrot.slane %v1831_v52, 4  ;;  %v1797_v31 = vrot.slane %v1796_v62, 1  ;;  %v1822_v34 = vadd.f32 %v1821_v7, %v1820_v47 }
 0x410   :  { %v1845_v55 = vrot.slane %v1844_v33, 4 }
 0x411   :  { %v1833_v29 = vadd.f32 %v1832_v15, %v1831_v52  ;;  %v1823_v20 = vrot.slane %v1822_v34, 1 }
 0x412   :  { %v1846_v4 = vadd.f32 %v1845_v55, %v1844_v33 }
 0x413   :  { %v1834_v0 = vrot.slane %v1833_v29, 2 }
 0x414   :  { %v1847_v26 = vrot.slane %v1846_v4, 2 }
 0x415   :  { %v1835_v61 = vadd.f32 %v1834_v0, %v1833_v29 }
 0x416   :  { %v1848_v19 = vadd.f32 %v1847_v26, %v1846_v4  ;;  %v2290_v30 = vpop.eup %2289  ;;  %v1824_v4 = vadd.f32 %v1823_v20, %v1822_v34 }
 0x417   :  { %v1836_v2 = vrot.slane %v1835_v61, 1  ;;  %v2939_v27 = vmul.f32 %v2290_v30, %v2831_v40  ;;  %v2942_v45 = vmul.f32 %v2290_v30, %v2829_v32  ;;  %v2945_v56 = vmul.f32 %v2290_v30, %v2855_v25 }
 0x418   :  { %v1849_v41 = vrot.slane %v1848_v19, 1  ;;  %v2948_v35 = vmul.f32 %v2290_v30, %v2853_v21  ;;  %v1428_v32 = vadd.f32 %v1427_v24, %v1426_v59  ;;  %v1798_v25 = vadd.f32 %v1797_v31, %v1796_v62 }
 0x419   :  { %v1837_v3 = vadd.f32 %v1836_v2, %v1835_v61  ;;  %v1765_v42 = vmul.f32 %v2939_v27, %v2939_v27  ;;  %v1766_v54 = vmul.f32 %v2942_v45, %v2942_v45  ;;  %v1767_v40 = vmul.f32 %v2945_v56, %v2945_v56 }
 0x41a   :  { %v1850_v11 = vadd.f32 %v1849_v41, %v1848_v19  ;;  %v1768_v33 = vmul.f32 %v2948_v35, %v2948_v35  ;;  %v1429_v47 = vrot.slane %v1428_v32, 2  ;;  %v1880_v29 = vsel %vm164_vm1, %v1798_v25, 0.0 }
 0x41b   :  { %v1889_v43 = vsel %vm164_vm1, %v1837_v3, 0.0  ;;  %v1851_v52 = vsel %vm164_vm1, %v1765_v42, 0.0  ;;  %v1852_v21 = vsel %vm164_vm1, %v1766_v54, 0.0  ;;  %v1854_v17 = vsel %vm164_vm1, %v1767_v40, 0.0 }
 0x41c   :  { %1890 = vadd.xlane.f32.xlu0 %v1889_v43  ;;  %v1892_v60 = vsel %vm164_vm1, %v1850_v11, 0.0  ;;  %v1853_v15 = vadd.f32 %v1852_v21, %v1851_v52  ;;  %v1856_v0 = vsel %vm164_vm1, %v1768_v33, 0.0  ;;  %v1430_v59 = vadd.f32 %v1429_v47, %v1428_v32 }
 0x41d   :  { %1893 = vadd.xlane.f32.xlu1 %v1892_v60  ;;  %v1886_v26 = vsel %vm164_vm1, %v1824_v4, 0.0 }
 0x41e   :  { %v1855_v55 = vadd.f32 %v1854_v17, %v1853_v15  ;;  %v1431_v30 = vrot.slane %v1430_v59, 1 }
 0x420   :  { %v1857_v62 = vadd.f32 %v1856_v0, %v1855_v55  ;;  %v1432_v31 = vadd.f32 %v1431_v30, %v1430_v59 }
 0x421   :  { %1881 = vadd.xlane.f32.xlu1 %v1880_v29  ;;  %v1879_v7 = vpop.xlane.xlu0 %1878 }
 0x422   :  { %2291 = vrsqrt.f32 %v1879_v7  ;;  %v1858_v61 = vrot.slane %v1857_v62, 4  ;;  %vm1903_vm0 = vcmp.eq.f32.partialorder %v1879_v7, inf  ;;  %v1906_v54 = vand.u32 2147483648, %v1879_v7 }
 0x423   :  { %v1466_v40 = vmul.f32 %v2590_v37, %v1432_v31  ;;  %vm1905_vm2 = vcmp.eq.f32.partialorder %v1879_v7, 0.0  ;;  %v1465_v25 = vmul.f32 %v2597_v39, %v1432_v31  ;;  %v1468_v55 = vmul.f32 %v2604_v53, %v1432_v31 }
 0x424   :  { %v1859_v19 = vadd.f32 %v1858_v61, %v1857_v62  ;;  %v1467_v4 = vmul.f32 %v2611_v57, %v1432_v31 }
 0x425   :  { %1887 = vadd.xlane.f32.xlu1 %v1886_v26 }
 0x426   :  { %v1860_v24 = vrot.slane %v1859_v19, 2 }
 0x428   :  { %v1861_v2 = vadd.f32 %v1860_v24, %v1859_v19 }
 0x42a   :  { %v1862_v41 = vrot.slane %v1861_v2, 1 }
 0x42c   :  { %v2292_v3 = vpop.eup %2291  ;;  %v1863_v34 = vadd.f32 %v1862_v41, %v1861_v2 }
 0x42d   :  { %v1902_v42 = vmul.f32 %v2292_v3, %v1879_v7 }
 0x42e   :  { %v1895_v32 = vsel %vm164_vm1, %v1863_v34, 0.0 }
 0x42f   :  { %v1904_v11 = vsel %vm1903_vm0, %v1879_v7, %v1902_v42  ;;  %1896 = vadd.xlane.f32.xlu0 %v1895_v32 }
 0x430   :  { %v2214_v43 = vpop.f32.mrb[14].mxu0  ;;  %v1907_v20 = vsel %vm1905_vm2, %v1906_v54, %v1904_v11 }
 0x431   :  { %v2969_v52 = vsub.f32 %v2214_v43, %v1466_v40  ;;  %v1358_v21 = vpop.f32.mrb[15].mxu0  ;;  %v1957_v60 = vmax.f32 %v1907_v20, 1e-12 }
 0x432   :  { %v2971_v33 = vsub.f32 %v1358_v21, %v1465_v25 }
 0x433   :  { %v1530_v15 = vmul.f32 %v2969_v52, %v2969_v52  ;;  %2293 = vrcp.f32 %v1957_v60 }
 0x434   :  { %v1529_v37 = vmul.f32 %v2971_v33, %v2971_v33 }
 0x435   :  { %v1625_v17 = vsel %vm164_vm1, %v1530_v15, 0.0 }
 0x436   :  { %v1624_v47 = vsel %vm164_vm1, %v1529_v37, 0.0 }
 0x437   :  { %v1626_v39 = vadd.f32 %v1625_v17, %v1624_v47 }
 0x438   :  { %v2217_v29 = vpop.f32.mrb[16].mxu0 }
 0x439   :  { %v1500_v0 = vsub.f32 %v2217_v29, %v1468_v55  ;;  %v1368_v62 = vpop.f32.mrb[17].mxu0 }
 0x43a   :  { %v1499_v7 = vsub.f32 %v1368_v62, %v1467_v4 }
 0x43b   :  { %v1532_v26 = vmul.f32 %v1500_v0, %v1500_v0 }
 0x43c   :  { %v1531_v59 = vmul.f32 %v1499_v7, %v1499_v7 }
 0x43d   :  { %v2294_v61 = vpop.eup %2293  ;;  %v1629_v57 = vsel %vm164_vm1, %v1532_v26, 0.0 }
 0x43e   :  { %v1627_v19 = vsel %vm164_vm1, %v1531_v59, 0.0  ;;  %v1966_v30 = vmul.f32 %v2294_v61, %v2686_v10  ;;  %v1967_v24 = vmul.f32 %v2294_v61, %v2689_v49  ;;  %v1968_v2 = vmul.f32 %v2294_v61, %v2692_v50  ;;  %v1885_v53 = vpop.xlane.xlu0 %1884 }
 0x43f   :  { %v1969_v41 = vmul.f32 %v2294_v61, %v2695_v58  ;;  %v1628_v3 = vadd.f32 %v1627_v19, %v1626_v39  ;;  %2295 = vrsqrt.f32 %v1885_v53  ;;  %vm1917_vm3 = vcmp.eq.f32.partialorder %v1885_v53, inf }
 0x440   :  { %2005 = vst.msk [vmem:[%s3171_s5] sm:$0xff] %vm164_vm1, %v1966_v30  ;;  %2006 = vst.msk [vmem:[%s3171_s5 + $0x8] sm:$0xff] %vm164_vm1, %v1967_v24  ;;  %v1920_v40 = vand.u32 2147483648, %v1885_v53  ;;  %vm1919_vm4 = vcmp.eq.f32.partialorder %v1885_v53, 0.0 }
 0x441   :  { %2007 = vst.msk [vmem:[%s3171_s5 + $0x10] sm:$0xff] %vm164_vm1, %v1968_v2  ;;  %2008 = vst.msk [vmem:[%s3171_s5 + $0x18] sm:$0xff] %vm164_vm1, %v1969_v41  ;;  %v1630_v10 = vadd.f32 %v1629_v57, %v1628_v3 }
 0x443   :  { %v1631_v49 = vrot.slane %v1630_v10, 4 }
 0x445   :  { %v1632_v50 = vadd.f32 %v1631_v49, %v1630_v10 }
 0x447   :  { %v1633_v58 = vrot.slane %v1632_v50, 2 }
 0x449   :  { %v2296_v31 = vpop.eup %2295  ;;  %v1634_v42 = vadd.f32 %v1633_v58, %v1632_v50 }
 0x44a   :  { %v1916_v34 = vmul.f32 %v2296_v31, %v1885_v53 }
 0x44b   :  { %v1635_v54 = vrot.slane %v1634_v42, 1 }
 0x44c   :  { %v1918_v11 = vsel %vm1917_vm3, %v1885_v53, %v1916_v34 }
 0x44d   :  { %v1636_v32 = vadd.f32 %v1635_v54, %v1634_v42  ;;  %v1921_v43 = vsel %vm1919_vm4, %v1920_v40, %v1918_v11 }
 0x44e   :  { %v1959_v25 = vmax.f32 %v1921_v43, 1e-12 }
 0x44f   :  { %2297 = vrsqrt.f32 %v1636_v32  ;;  %vm1688_vm5 = vcmp.eq.f32.partialorder %v1636_v32, inf  ;;  %v1691_v15 = vand.u32 2147483648, %v1636_v32  ;;  %vm1690_vm6 = vcmp.eq.f32.partialorder %v1636_v32, 0.0 }
 0x450   :  { %2299 = vrcp.f32 %v1959_v25 }
 0x459   :  { %v2298_v20 = vpop.eup %2297 }
 0x45a   :  { %v2300_v21 = vpop.eup %2299  ;;  %v1687_v60 = vmul.f32 %v2298_v20, %v1636_v32 }
 0x45b   :  { %v1976_v37 = vmul.f32 %v2300_v21, %v2725_v8  ;;  %v1977_v17 = vmul.f32 %v2300_v21, %v2728_v36  ;;  %v1978_v47 = vmul.f32 %v2300_v21, %v2731_v38  ;;  %v1979_v39 = vmul.f32 %v2300_v21, %v2734_v63 }
 0x45c   :  { %v1689_v55 = vsel %vm1688_vm5, %v1636_v32, %v1687_v60 }
 0x45d   :  { %v1692_v29 = vsel %vm1690_vm6, %v1691_v15, %v1689_v55  ;;  %2013 = vst.msk [vmem:[%s3171_s5 + $0x40] sm:$0xff] %vm164_vm1, %v1976_v37  ;;  %2014 = vst.msk [vmem:[%s3171_s5 + $0x48] sm:$0xff] %vm164_vm1, %v1977_v17 }
 0x45e   :  { %2015 = vst.msk [vmem:[%s3171_s5 + $0x50] sm:$0xff] %vm164_vm1, %v1978_v47  ;;  %2016 = vst.msk [vmem:[%s3171_s5 + $0x58] sm:$0xff] %vm164_vm1, %v1979_v39  ;;  %v1700_v8 = vmax.f32 %v1692_v29, 1e-12 }
 0x460   :  { %2301 = vrcp.f32 %v1700_v8 }
 0x46a   :  { %v2302_v36 = vpop.eup %2301 }
 0x46b   :  { %v3024_v38 = vmul.f32 %v2302_v36, %v2971_v33  ;;  %v3027_v63 = vmul.f32 %v2302_v36, %v2969_v52  ;;  %v3029_v4 = vmul.f32 %v2302_v36, %v1499_v7  ;;  %v3031_v62 = vmul.f32 %v2302_v36, %v1500_v0 }
 0x46d   :  { %v1769_v59 = vmul.f32 %v3024_v38, %v3024_v38  ;;  %v1770_v26 = vmul.f32 %v3027_v63, %v3027_v63  ;;  %v1771_v61 = vmul.f32 %v3029_v4, %v3029_v4  ;;  %v1772_v52 = vmul.f32 %v3031_v62, %v3031_v62 }
 0x46f   :  { %v1864_v19 = vsel %vm164_vm1, %v1769_v59, 0.0  ;;  %v1865_v33 = vsel %vm164_vm1, %v1770_v26, 0.0  ;;  %v1867_v0 = vsel %vm164_vm1, %v1771_v61, 0.0  ;;  %v1869_v24 = vsel %vm164_vm1, %v1772_v52, 0.0 }
 0x470   :  { %v1866_v7 = vadd.f32 %v1865_v33, %v1864_v19 }
 0x472   :  { %v1868_v30 = vadd.f32 %v1867_v0, %v1866_v7 }
 0x474   :  { %v1870_v2 = vadd.f32 %v1869_v24, %v1868_v30 }
 0x476   :  { %v1871_v41 = vrot.slane %v1870_v2, 4 }
 0x478   :  { %v1872_v53 = vadd.f32 %v1871_v41, %v1870_v2 }
 0x47a   :  { %v1873_v3 = vrot.slane %v1872_v53, 2 }
 0x47c   :  { %v1874_v57 = vadd.f32 %v1873_v3, %v1872_v53 }
 0x47e   :  { %v1875_v10 = vrot.slane %v1874_v57, 1 }
 0x480   :  { %v1876_v49 = vadd.f32 %v1875_v10, %v1874_v57 }
 0x482   :  { %v1898_v50 = vsel %vm164_vm1, %v1876_v49, 0.0 }
 0x483   :  { %1899 = vadd.xlane.f32.xlu1 %v1898_v50 }
 0x4a9   :  { %v1891_v58 = vpop.xlane.xlu0 %1890 }
 0x4aa   :  { %2303 = vrsqrt.f32 %v1891_v58  ;;  %v1894_v31 = vpop.xlane.xlu1 %1893  ;;  %vm1931_vm7 = vcmp.eq.f32.partialorder %v1891_v58, inf  ;;  %v1934_v32 = vand.u32 2147483648, %v1891_v58  ;;  %vm1933_vm8 = vcmp.eq.f32.partialorder %v1891_v58, 0.0 }
 0x4ab   :  { %2305 = vrsqrt.f32 %v1894_v31  ;;  %vm1938_vm9 = vcmp.eq.f32.partialorder %v1894_v31, inf  ;;  %v1941_v20 = vand.u32 2147483648, %v1894_v31  ;;  %vm1940_vm10 = vcmp.eq.f32.partialorder %v1894_v31, 0.0 }
 0x4ae   :  { %v1882_v42 = vpop.xlane.xlu1 %1881 }
 0x4af   :  { %2307 = vrsqrt.f32 %v1882_v42  ;;  %vm1910_vm11 = vcmp.eq.f32.partialorder %v1882_v42, inf  ;;  %v1913_v55 = vand.u32 2147483648, %v1882_v42  ;;  %vm1912_vm12 = vcmp.eq.f32.partialorder %v1882_v42, 0.0 }
 0x4b2   :  { %v1888_v34 = vpop.xlane.xlu1 %1887 }
 0x4b3   :  { %2309 = vrsqrt.f32 %v1888_v34  ;;  %vm1924_vm13 = vcmp.eq.f32.partialorder %v1888_v34, inf  ;;  %v1927_v19 = vand.u32 2147483648, %v1888_v34  ;;  %vm1926_vm14 = vcmp.eq.f32.partialorder %v1888_v34, 0.0 }
 0x4b4   :  { %v2304_v54 = vpop.eup %2303 }
 0x4b5   :  { %v2306_v40 = vpop.eup %2305  ;;  %v1930_v11 = vmul.f32 %v2304_v54, %v1891_v58 }
 0x4b6   :  { %v1937_v43 = vmul.f32 %v2306_v40, %v1894_v31 }
 0x4b7   :  { %v1932_v25 = vsel %vm1931_vm7, %v1891_v58, %v1930_v11 }
 0x4b8   :  { %v1935_v21 = vsel %vm1933_vm8, %v1934_v32, %v1932_v25  ;;  %v1939_v60 = vsel %vm1938_vm9, %v1894_v31, %v1937_v43 }
 0x4b9   :  { %v2308_v15 = vpop.eup %2307  ;;  %v1961_v37 = vmax.f32 %v1935_v21, 1e-12  ;;  %v1942_v17 = vsel %vm1940_vm10, %v1941_v20, %v1939_v60 }
 0x4ba   :  { %v1962_v47 = vmax.f32 %v1942_v17, 1e-12  ;;  %v1909_v39 = vmul.f32 %v2308_v15, %v1882_v42 }
 0x4bb   :  { %2311 = vrcp.f32 %v1961_v37 }
 0x4bc   :  { %2313 = vrcp.f32 %v1962_v47  ;;  %v1911_v29 = vsel %vm1910_vm11, %v1882_v42, %v1909_v39  ;;  %v1897_v61 = vpop.xlane.xlu0 %1896 }
 0x4bd   :  { %v2310_v8 = vpop.eup %2309  ;;  %v1914_v36 = vsel %vm1912_vm12, %v1913_v55, %v1911_v29  ;;  %2315 = vrsqrt.f32 %v1897_v61  ;;  %vm1945_vm15 = vcmp.eq.f32.partialorder %v1897_v61, inf  ;;  %vm1947_vm0 = vcmp.eq.f32.partialorder %v1897_v61, 0.0 }
 0x4be   :  { %v1958_v59 = vmax.f32 %v1914_v36, 1e-12  ;;  %v1923_v26 = vmul.f32 %v2310_v8, %v1888_v34 }
 0x4c0   :  { %2317 = vrcp.f32 %v1958_v59  ;;  %v1925_v33 = vsel %vm1924_vm13, %v1888_v34, %v1923_v26 }
 0x4c1   :  { %v1928_v52 = vsel %vm1926_vm14, %v1927_v19, %v1925_v33 }
 0x4c2   :  { %v1960_v7 = vmax.f32 %v1928_v52, 1e-12 }
 0x4c4   :  { %2319 = vrcp.f32 %v1960_v7 }
 0x4c5   :  { %v2312_v0 = vpop.eup %2311 }
 0x4c6   :  { %v2314_v30 = vpop.eup %2313  ;;  %v1986_v24 = vmul.f32 %v2312_v0, %v2888_v44  ;;  %v1987_v2 = vmul.f32 %v2312_v0, %v2891_v18  ;;  %v1988_v41 = vmul.f32 %v2312_v0, %v2894_v51  ;;  %v1989_v53 = vmul.f32 %v2312_v0, %v2897_v1 }
 0x4c7   :  { %v1991_v3 = vmul.f32 %v2314_v30, %v2900_v9  ;;  %v1992_v57 = vmul.f32 %v2314_v30, %v2903_v22  ;;  %v1993_v10 = vmul.f32 %v2314_v30, %v2906_v23  ;;  %v1994_v49 = vmul.f32 %v2314_v30, %v2909_v28  ;;  %v2316_v44 = vpop.eup %2315 }
 0x4c8   :  { %2021 = vst.msk [vmem:[%s3171_s5 + $0x80] sm:$0xff] %vm164_vm1, %v1986_v24  ;;  %2022 = vst.msk [vmem:[%s3171_s5 + $0x88] sm:$0xff] %vm164_vm1, %v1987_v2  ;;  %v1944_v51 = vmul.f32 %v2316_v44, %v1897_v61  ;;  %v1948_v1 = vand.u32 2147483648, %v1897_v61 }
 0x4c9   :  { %2023 = vst.msk [vmem:[%s3171_s5 + $0x90] sm:$0xff] %vm164_vm1, %v1988_v41  ;;  %2024 = vst.msk [vmem:[%s3171_s5 + $0x98] sm:$0xff] %vm164_vm1, %v1989_v53 }
 0x4ca   :  { %2025 = vst.msk [vmem:[%s3171_s5 + $0xa0] sm:$0xff] %vm164_vm1, %v1991_v3  ;;  %2026 = vst.msk [vmem:[%s3171_s5 + $0xa8] sm:$0xff] %vm164_vm1, %v1992_v57  ;;  %v2318_v18 = vpop.eup %2317  ;;  %v1946_v50 = vsel %vm1945_vm15, %v1897_v61, %v1944_v51 }
 0x4cb   :  { %2027 = vst.msk [vmem:[%s3171_s5 + $0xb0] sm:$0xff] %vm164_vm1, %v1993_v10  ;;  %2028 = vst.msk [vmem:[%s3171_s5 + $0xb8] sm:$0xff] %vm164_vm1, %v1994_v49  ;;  %v1971_v9 = vmul.f32 %v2318_v18, %v2710_v5  ;;  %v1972_v22 = vmul.f32 %v2318_v18, %v2713_v6  ;;  %v1973_v23 = vmul.f32 %v2318_v18, %v2716_v14 }
 0x4cc   :  { %v1974_v28 = vmul.f32 %v2318_v18, %v2719_v16  ;;  %v1949_v5 = vsel %vm1947_vm0, %v1948_v1, %v1946_v50 }
 0x4cd   :  { %2009 = vst.msk [vmem:[%s3171_s5 + $0x20] sm:$0xff] %vm164_vm1, %v1971_v9  ;;  %2010 = vst.msk [vmem:[%s3171_s5 + $0x28] sm:$0xff] %vm164_vm1, %v1972_v22  ;;  %v1963_v14 = vmax.f32 %v1949_v5, 1e-12 }
 0x4ce   :  { %2011 = vst.msk [vmem:[%s3171_s5 + $0x30] sm:$0xff] %vm164_vm1, %v1973_v23  ;;  %2012 = vst.msk [vmem:[%s3171_s5 + $0x38] sm:$0xff] %vm164_vm1, %v1974_v28  ;;  %v2320_v6 = vpop.eup %2319 }
 0x4cf   :  { %v1981_v16 = vmul.f32 %v2320_v6, %v2841_v46  ;;  %v1982_v58 = vmul.f32 %v2320_v6, %v2844_v48  ;;  %v1983_v31 = vmul.f32 %v2320_v6, %v2847_v12  ;;  %v1984_v42 = vmul.f32 %v2320_v6, %v2851_v13 }
 0x4d0   :  { %2321 = vrcp.f32 %v1963_v14 }
 0x4d1   :  { %2017 = vst.msk [vmem:[%s3171_s5 + $0x60] sm:$0xff] %vm164_vm1, %v1981_v16  ;;  %2018 = vst.msk [vmem:[%s3171_s5 + $0x68] sm:$0xff] %vm164_vm1, %v1982_v58 }
 0x4d2   :  { %2019 = vst.msk [vmem:[%s3171_s5 + $0x70] sm:$0xff] %vm164_vm1, %v1983_v31  ;;  %2020 = vst.msk [vmem:[%s3171_s5 + $0x78] sm:$0xff] %vm164_vm1, %v1984_v42 }
 0x4da   :  { %v2322_v46 = vpop.eup %2321 }
 0x4db   :  { %v1996_v48 = vmul.f32 %v2322_v46, %v2939_v27  ;;  %v1997_v12 = vmul.f32 %v2322_v46, %v2942_v45  ;;  %v1998_v13 = vmul.f32 %v2322_v46, %v2945_v56  ;;  %v1999_v34 = vmul.f32 %v2322_v46, %v2948_v35 }
 0x4dd   :  { %2029 = vst.msk [vmem:[%s3171_s5 + $0xc0] sm:$0xff] %vm164_vm1, %v1996_v48  ;;  %2030 = vst.msk [vmem:[%s3171_s5 + $0xc8] sm:$0xff] %vm164_vm1, %v1997_v12 }
 0x4de   :  { %2031 = vst.msk [vmem:[%s3171_s5 + $0xd0] sm:$0xff] %vm164_vm1, %v1998_v13  ;;  %2032 = vst.msk [vmem:[%s3171_s5 + $0xd8] sm:$0xff] %vm164_vm1, %v1999_v34 }
 0x510   :  { %v1900_v27 = vpop.xlane.xlu1 %1899 }
 0x511   :  { %2323 = vrsqrt.f32 %v1900_v27  ;;  %vm1952_vm2 = vcmp.eq.f32.partialorder %v1900_v27, inf  ;;  %v1955_v35 = vand.u32 2147483648, %v1900_v27  ;;  %vm1954_vm3 = vcmp.eq.f32.partialorder %v1900_v27, 0.0 }
 0x51b   :  { %v2324_v45 = vpop.eup %2323 }
 0x51c   :  { %v1951_v56 = vmul.f32 %v2324_v45, %v1900_v27 }
 0x51e   :  { %v1953_v54 = vsel %vm1952_vm2, %v1900_v27, %v1951_v56 }
 0x51f   :  { %v1956_v40 = vsel %vm1954_vm3, %v1955_v35, %v1953_v54 }
 0x520   :  { %v1964_v11 = vmax.f32 %v1956_v40, 1e-12 }
 0x522   :  { %2325 = vrcp.f32 %v1964_v11 }
 0x52c   :  { %v2326_v32 = vpop.eup %2325 }
 0x52d   :  { %v2001_v43 = vmul.f32 %v2326_v32, %v3024_v38  ;;  %v2002_v25 = vmul.f32 %v2326_v32, %v3027_v63  ;;  %v2003_v20 = vmul.f32 %v2326_v32, %v3029_v4  ;;  %v2004_v21 = vmul.f32 %v2326_v32, %v3031_v62 }
 0x52f   :  { %2033 = vst.msk [vmem:[%s3171_s5 + $0xe0] sm:$0xff] %vm164_vm1, %v2001_v43  ;;  %2034 = vst.msk [vmem:[%s3171_s5 + $0xe8] sm:$0xff] %vm164_vm1, %v2002_v25 }
 0x530   :  { %2035 = vst.msk [vmem:[%s3171_s5 + $0xf0] sm:$0xff] %vm164_vm1, %v2003_v20  ;;  %2036 = vst.msk [vmem:[%s3171_s5 + $0xf8] sm:$0xff] %vm164_vm1, %v2004_v21 }

</bundles_post_ra>
